<compile_context>
chip_gen: v6e
topology: v6e:2x2x1
jax: 0.10.0
libtpu: 0.0.40
codegen_flags: <defaults>
</compile_context>

<pallas_src>
import numpy as np
import jax
import jax.numpy as jnp
from jax.experimental import pallas as pl
from jax.experimental.pallas import tpu as pltpu


def _round_up(a: int, b: int) -> int:
    return (a + b - 1) // b * b


# --------------------------------------------------------------------------- #
# Kernel helpers (shared by the single-step and multi-step kernels)
# --------------------------------------------------------------------------- #
def _tile_messages_scatter(st_ref, tgtc_ref, ea_ref,
                           xw1_ref, w1e_ref, b1_ref, w2_ref, b2_ref):
    """Per-edge-tile: fused gather+layer1 -> ReLU -> layer2 -> scatter-by-target.

    Returns the tile's contribution to the transposed aggregation
    agg_T [fout, N] in f32.
    """
    n2 = xw1_ref.shape[1]            # 2*N
    n = n2 // 2
    te = ea_ref.shape[1]             # edge tile (multiple of 128)

    # Lane-major edge ids: [1, 2*tE] = [src_tile | tgt_tile].
    ids = st_ref[0]                  # [1, 2*tE]
    src = ids[:, :te]                # [1, tE]
    tgt = ids[:, te:]                # [1, tE]

    # Combined one-hot (transposed): row j<N matches src==j, row j>=N matches
    # tgt+N==j.  Padded edges use src=2N / tgt=N -> all-zero column.
    row_iota = jax.lax.broadcasted_iota(jnp.int32, (n2, te), 0)
    onehot2n_t = ((row_iota == src) | (row_iota == tgt + n)).astype(jnp.bfloat16)

    # Fused gather + message layer 1 (single K=2N matmul) + edge-attr term.
    h_t = (jnp.dot(xw1_ref[...], onehot2n_t, preferred_element_type=jnp.float32)
           + jnp.dot(w1e_ref[...], ea_ref[...], preferred_element_type=jnp.float32)
           + b1_ref[...])                                   # [fout, tE] f32
    h_t = jnp.maximum(h_t, 0.0)

    # Message layer 2 (transposed): messages_T = w2^T @ relu(h)_T + b2.
    msg_t = (jnp.dot(w2_ref[...], h_t.astype(jnp.bfloat16),
                     preferred_element_type=jnp.float32)
             + b2_ref[...])                                 # [fout, tE] f32

    # Scatter one-hot in canonical RHS orientation [tE, N] (edges on sublanes),
    # built from the tiny sublane-major tgt column so the K=tE contraction is a
    # plain [fout,tE] @ [tE,N] matmul (no transposed-operand lowering).
    lane_iota = jax.lax.broadcasted_iota(jnp.int32, (te, n), 1)
    onehot_tgt = (lane_iota == tgtc_ref[...]).astype(jnp.bfloat16)   # [tE, N]

    return jnp.dot(msg_t.astype(jnp.bfloat16), onehot_tgt,
                   preferred_element_type=jnp.float32)      # [fout, N] f32


def _update_head(xt_ref, w3x_ref, w3a_ref, b3_ref, w4_ref, b4_ref, agg_t):
    """update_mlp(cat([x, aggregated])), computed feature-major -> [fout, N]."""
    u_t = (jnp.dot(w3x_ref[...], xt_ref[...], preferred_element_type=jnp.float32)
           + jnp.dot(w3a_ref[...], agg_t.astype(jnp.bfloat16),
                     preferred_element_type=jnp.float32)
           + b3_ref[...])
    u_t = jnp.maximum(u_t, 0.0)
    return (jnp.dot(w4_ref[...], u_t.astype(jnp.bfloat16),
                    preferred_element_type=jnp.float32)
            + b4_ref[...])                                  # [fout, N] f32


def _cgc_kernel_single(st_ref, tgtc_ref, ea_ref,
                       xw1_ref, w1e_ref, b1_ref, w2_ref, b2_ref,
                       xt_ref, w3x_ref, w3a_ref, b3_ref, w4_ref, b4_ref,
                       out_ref):
    agg_t = _tile_messages_scatter(st_ref, tgtc_ref, ea_ref,
                                   xw1_ref, w1e_ref, b1_ref, w2_ref, b2_ref)
    out_ref[...] = _update_head(xt_ref, w3x_ref, w3a_ref, b3_ref, w4_ref,
                                b4_ref, agg_t).astype(out_ref.dtype)


def _cgc_kernel_multi(st_ref, tgtc_ref, ea_ref,
                      xw1_ref, w1e_ref, b1_ref, w2_ref, b2_ref,
                      xt_ref, w3x_ref, w3a_ref, b3_ref, w4_ref, b4_ref,
                      out_ref, acc_ref):
    step = pl.program_id(0)
    contrib = _tile_messages_scatter(st_ref, tgtc_ref, ea_ref,
                                     xw1_ref, w1e_ref, b1_ref, w2_ref, b2_ref)

    @pl.when(step == 0)
    def _init():
        acc_ref[...] = contrib

    @pl.when(step != 0)
    def _accum():
        acc_ref[...] = acc_ref[...] + contrib

    @pl.when(step == pl.num_programs(0) - 1)
    def _finalize():
        out_ref[...] = _update_head(xt_ref, w3x_ref, w3a_ref, b3_ref, w4_ref,
                                    b4_ref, acc_ref[...]).astype(out_ref.dtype)


# --------------------------------------------------------------------------- #
# Wrapper
# --------------------------------------------------------------------------- #
def chess_graph_conv(x, edge_index, edge_attr, params, *, edge_tile=1024):
    """x: [N, Fin] f32, edge_index: [2, E] int, edge_attr: [E, Fe] f32."""
    N, fin = x.shape
    E, fe = edge_attr.shape
    fout = params["w2"].shape[1]
    assert E >= 1

    # --- edge tiling / padding (tE multiple of 128; one step for small E) ----
    tE = min(_round_up(E, 128), _round_up(max(edge_tile, 1), 128))
    E_pad = _round_up(E, tE)
    n_steps = E_pad // tE
    pad = E_pad - E

    src = edge_index[0].astype(jnp.int32)
    tgt = edge_index[1].astype(jnp.int32)
    # Pad values chosen so padded edges match NO row/lane of any one-hot:
    #   src -> 2N  (combined one-hot rows span [0, 2N))
    #   tgt -> N   (tgt+N = 2N out of range; also != any lane in [0, N))
    src_p = jnp.pad(src, (0, pad), constant_values=2 * N).reshape(n_steps, tE)
    tgt_p = jnp.pad(tgt, (0, pad), constant_values=N).reshape(n_steps, tE)
    # Lane-major ids for the big (layer-1) one-hot: [n_steps, 1, 2*tE].
    st_row = jnp.concatenate([src_p, tgt_p], axis=1).reshape(n_steps, 1, 2 * tE)
    # Tiny sublane-major tgt column for the canonical scatter one-hot.
    tgt_col = jnp.pad(tgt, (0, pad), constant_values=N).reshape(E_pad, 1)
    # Edge features pre-transposed (feature-major): [fe, E_pad].
    ea_t = jnp.pad(edge_attr, ((0, pad), (0, 0))).T.astype(jnp.bfloat16)

    # --- weights: split/stack concat-facing matrices, feature-major, bf16 ----
    w1 = params["w1"]                       # [2*fin + fe, fout]
    w1s, w1t, w1e = w1[:fin], w1[fin:2 * fin], w1[2 * fin:]
    w3 = params["w3"]                       # [fin + fout, fout]
    w3x, w3a = w3[:fin], w3[fin:]
    bf = lambda a: a.astype(jnp.bfloat16)
    col = lambda b: b.reshape(fout, 1).astype(jnp.float32)

    # Fused gather+layer1 weights: [fout, 2N] = [ (x@w1s)^T | (x@w1t)^T ].
    xw1_t = jnp.concatenate([(x @ w1s).T, (x @ w1t).T], axis=1).astype(jnp.bfloat16)
    x_t = bf(x.T)                           # [fin, N]

    args = (
        st_row, tgt_col, ea_t,
        xw1_t, bf(w1e.T), col(params["b1"]),
        bf(params["w2"].T), col(params["b2"]),
        x_t, bf(w3x.T), bf(w3a.T), col(params["b3"]),
        bf(params["w4"].T), col(params["b4"]),
    )

    # Edge streams tile through VMEM; everything else stays resident.
    in_specs = [
        pl.BlockSpec((1, 1, 2 * tE), lambda e: (e, 0, 0)),   # lane-major ids
        pl.BlockSpec((tE, 1), lambda e: (e, 0)),             # tgt column (scatter)
        pl.BlockSpec((fe, tE), lambda e: (0, e)),            # edge_attr^T tile
    ] + [pl.BlockSpec(a.shape, lambda e: (0, 0)) for a in args[3:]]
    out_specs = pl.BlockSpec((fout, N), lambda e: (0, 0))

    # Advisory cost estimate.
    flops = (2 * fout * (2 * N) * E_pad          # fused gather + layer 1
             + 2 * fout * fe * E_pad             # edge-attr term
             + 2 * fout * fout * E_pad           # message layer 2
             + 2 * fout * E_pad * N              # scatter-add
             + 2 * fout * (fin + 2 * fout) * N)  # update MLP
    bytes_accessed = (sum(int(a.size) * a.dtype.itemsize for a in args)
                      + fout * N * 4)

    # True VMEM footprint + headroom (v7x has only 64 MiB / TC; no 32 MiB floor).
    resident_bytes = sum(int(a.size) * a.dtype.itemsize for a in args[3:])
    stream_bytes = 2 * (2 * tE * 4 + tE * 4 + fe * tE * 2)   # double-buffered
    acc_out_bytes = (0 if n_steps == 1 else fout * N * 4) + 2 * fout * N * 4
    temp_bytes = (2 * (2 * N) * tE * 4            # int32 compare temporaries
                  + (2 * N) * tE * 2              # combined one-hot (bf16)
                  + tE * N * (4 + 2)              # scatter iota + one-hot
                  + 6 * fout * tE * 4)            # h / messages (f32 + bf16)
    vmem_limit = int(min(96 * 2**20,
                         resident_bytes + stream_bytes + acc_out_bytes
                         + temp_bytes + (4 << 20)))

    kernel = _cgc_kernel_single if n_steps == 1 else _cgc_kernel_multi
    scratch = [] if n_steps == 1 else [pltpu.VMEM((fout, N), jnp.float32)]

    out_t = pl.pallas_call(
        kernel,
        out_shape=jax.ShapeDtypeStruct((fout, N), jnp.float32),
        grid_spec=pltpu.PrefetchScalarGridSpec(
            num_scalar_prefetch=0,
            grid=(n_steps,),
            in_specs=in_specs,
            out_specs=out_specs,
            scratch_shapes=scratch),
        compiler_params=pltpu.CompilerParams(
            dimension_semantics=("arbitrary",),
            vmem_limit_bytes=vmem_limit),
        cost_estimate=pl.CostEstimate(
            flops=flops, transcendentals=0, bytes_accessed=bytes_accessed),
    )(*args)

    # Kernel computes feature-major [fout, N]; return node-major like the module.
    return out_t.T


def _linear_init(key, fan_in, fan_out):
    """Deterministic torch-nn.Linear-style init (uniform(-1/sqrt(fan_in), ...))."""
    bound = 1.0 / np.sqrt(fan_in)
    kw, kb = jax.random.split(key)
    w = jax.random.uniform(kw, (fan_in, fan_out), jnp.float32, -bound, bound)
    b = jax.random.uniform(kb, (fan_out,), jnp.float32, -bound, bound)
    return w, b


if __name__ == "__main__":
    key = jax.random.PRNGKey(0)
    keys = jax.random.split(key, 8)

    # Chess-like graph: 64 squares, 300 edges (non-multiple of the tile size to
    # exercise padding).
    N, E = 64, 300
    fin, fe, fout = 16, 8, 32

    x = jax.random.normal(keys[0], (N, fin), jnp.float32)
    src = jax.random.randint(keys[1], (E,), 0, N, jnp.int32)
    tgt = jax.random.randint(keys[2], (E,), 0, N, jnp.int32)
    edge_index = jnp.stack([src, tgt])
    edge_attr = jax.random.normal(keys[3], (E, fe), jnp.float32)

    w1, b1 = _linear_init(keys[4], 2 * fin + fe, fout)
    w2, b2 = _linear_init(keys[5], fout, fout)
    w3, b3 = _linear_init(keys[6], fin + fout, fout)
    w4, b4 = _linear_init(keys[7], fout, fout)
    params = dict(w1=w1, b1=b1, w2=w2, b2=b2, w3=w3, b3=b3, w4=w4, b4=b4)

    # Pure-f32 JAX reference mirroring the PyTorch forward exactly.
    def reference(x, edge_index, edge_attr):
        s, t = edge_index
        m = jnp.concatenate([x[s], x[t], edge_attr], axis=1)
        m = jnp.maximum(m @ w1 + b1, 0.0) @ w2 + b2
        agg = jnp.zeros((N, fout), jnp.float32).at[t].add(m)
        u = jnp.concatenate([x, agg], axis=1)
        return jnp.maximum(u @ w3 + b3, 0.0) @ w4 + b4

    expected = np.asarray(reference(x, edge_index, edge_attr))

    # edge_tile=1024 -> single-step path (tE=384, no accumulator scratch);
    # edge_tile=128  -> multi-step path (3 edge tiles, resident f32 accumulator).
    for et in (1024, 128):
        out = chess_graph_conv(x, edge_index, edge_attr, params, edge_tile=et)
        out = jax.block_until_ready(out)
        got = np.asarray(out)
        # bf16 MXU operands (f32 accumulation) => small drift vs f32 reference.
        assert np.allclose(got, expected, rtol=5e-2, atol=5e-2), (
            et, float(np.max(np.abs(got - expected))))

    print("KERNEL_OK")
</pallas_src>

<mosaic_0001>
module attributes {stable_mosaic.version = 11 : i64} {
  func.func @_cgc_kernel_single(%arg0: i32, %arg1: memref<1x1x768xi32, #tpu.memory_space<vmem>>, %arg2: memref<384x1xi32, #tpu.memory_space<vmem>>, %arg3: memref<8x384xbf16, #tpu.memory_space<vmem>>, %arg4: memref<32x128xbf16, #tpu.memory_space<vmem>>, %arg5: memref<32x8xbf16, #tpu.memory_space<vmem>>, %arg6: memref<32x1xf32, #tpu.memory_space<vmem>>, %arg7: memref<32x32xbf16, #tpu.memory_space<vmem>>, %arg8: memref<32x1xf32, #tpu.memory_space<vmem>>, %arg9: memref<16x64xbf16, #tpu.memory_space<vmem>>, %arg10: memref<32x16xbf16, #tpu.memory_space<vmem>>, %arg11: memref<32x32xbf16, #tpu.memory_space<vmem>>, %arg12: memref<32x1xf32, #tpu.memory_space<vmem>>, %arg13: memref<32x32xbf16, #tpu.memory_space<vmem>>, %arg14: memref<32x1xf32, #tpu.memory_space<vmem>>, %arg15: memref<32x64xf32, #tpu.memory_space<vmem>>) attributes {dimension_semantics = [#tpu.dimension_semantics<arbitrary>], iteration_bounds = array<i64: 1>, scalar_prefetch = 0 : i64, scratch_operands = 0 : i64, tpu.core_type = #tpu.core_type<tc>, window_params = [{transform_indices = @transform_0, window_bounds = array<i64: 1, 1, 768>}, {transform_indices = @transform_1, window_bounds = array<i64: 384, 1>}, {transform_indices = @transform_2, window_bounds = array<i64: 8, 384>}, {pipeline_mode = #tpu.pipeline_mode<synchronous>, transform_indices = @transform_3, window_bounds = array<i64: 32, 128>}, {pipeline_mode = #tpu.pipeline_mode<synchronous>, transform_indices = @transform_4, window_bounds = array<i64: 32, 8>}, {pipeline_mode = #tpu.pipeline_mode<synchronous>, transform_indices = @transform_5, window_bounds = array<i64: 32, 1>}, {pipeline_mode = #tpu.pipeline_mode<synchronous>, transform_indices = @transform_6, window_bounds = array<i64: 32, 32>}, {pipeline_mode = #tpu.pipeline_mode<synchronous>, transform_indices = @transform_7, window_bounds = array<i64: 32, 1>}, {pipeline_mode = #tpu.pipeline_mode<synchronous>, transform_indices = @transform_8, window_bounds = array<i64: 16, 64>}, {pipeline_mode = #tpu.pipeline_mode<synchronous>, transform_indices = @transform_9, window_bounds = array<i64: 32, 16>}, {pipeline_mode = #tpu.pipeline_mode<synchronous>, transform_indices = @transform_10, window_bounds = array<i64: 32, 32>}, {pipeline_mode = #tpu.pipeline_mode<synchronous>, transform_indices = @transform_11, window_bounds = array<i64: 32, 1>}, {pipeline_mode = #tpu.pipeline_mode<synchronous>, transform_indices = @transform_12, window_bounds = array<i64: 32, 32>}, {pipeline_mode = #tpu.pipeline_mode<synchronous>, transform_indices = @transform_13, window_bounds = array<i64: 32, 1>}, {pipeline_mode = #tpu.pipeline_mode<synchronous>, transform_indices = @transform_14, window_bounds = array<i64: 32, 64>}]} {
    %c0 = arith.constant 0 : index
    %c0_0 = arith.constant 0 : index
    %c0_1 = arith.constant 0 : index
    %0 = vector.load %arg1[%c0, %c0_0, %c0_1] : memref<1x1x768xi32, #tpu.memory_space<vmem>>, vector<1x1x768xi32>
    %1 = vector.shape_cast %0 : vector<1x1x768xi32> to vector<1x768xi32>
    %2 = vector.extract_strided_slice %1 {offsets = [0, 0], sizes = [1, 384], strides = [1, 1]} : vector<1x768xi32> to vector<1x384xi32>
    %3 = vector.extract_strided_slice %1 {offsets = [0, 384], sizes = [1, 384], strides = [1, 1]} : vector<1x768xi32> to vector<1x384xi32>
    %4 = tpu.iota {dimensions = array<i32: 0>} : vector<128x384xi32>
    %5 = vector.broadcast %2 : vector<1x384xi32> to vector<128x384xi32>
    %6 = arith.cmpi eq, %4, %5 : vector<128x384xi32>
    %c64_i32 = arith.constant 64 : i32
    %7 = vector.broadcast %c64_i32 : i32 to vector<1x384xi32>
    %8 = arith.addi %3, %7 : vector<1x384xi32>
    %9 = vector.broadcast %8 : vector<1x384xi32> to vector<128x384xi32>
    %10 = arith.cmpi eq, %4, %9 : vector<128x384xi32>
    %11 = arith.ori %6, %10 : vector<128x384xi1>
    %12 = arith.extui %11 : vector<128x384xi1> to vector<128x384xi32>
    %13 = arith.sitofp %12 : vector<128x384xi32> to vector<128x384xf32>
    %14 = arith.truncf %13 : vector<128x384xf32> to vector<128x384xbf16>
    %c0_2 = arith.constant 0 : index
    %c0_3 = arith.constant 0 : index
    %15 = vector.load %arg4[%c0_2, %c0_3] : memref<32x128xbf16, #tpu.memory_space<vmem>>, vector<32x128xbf16>
    %cst = arith.constant dense<0.000000e+00> : vector<32x384xf32>
    %16 = tpu.matmul %15, %14, %cst {dimension_numbers = #tpu.dot_dimension_numbers<[1], [0], [0], [1], [0, 0, 1, 1], [], []>} : vector<32x128xbf16>, vector<128x384xbf16>, vector<32x384xf32> -> vector<32x384xf32>
    %c0_4 = arith.constant 0 : index
    %c0_5 = arith.constant 0 : index
    %17 = vector.load %arg5[%c0_4, %c0_5] : memref<32x8xbf16, #tpu.memory_space<vmem>>, vector<32x8xbf16>
    %c0_6 = arith.constant 0 : index
    %c0_7 = arith.constant 0 : index
    %18 = vector.load %arg3[%c0_6, %c0_7] : memref<8x384xbf16, #tpu.memory_space<vmem>>, vector<8x384xbf16>
    %cst_8 = arith.constant dense<0.000000e+00> : vector<32x384xf32>
    %19 = tpu.matmul %17, %18, %cst_8 {dimension_numbers = #tpu.dot_dimension_numbers<[1], [0], [0], [1], [0, 0, 1, 1], [], []>} : vector<32x8xbf16>, vector<8x384xbf16>, vector<32x384xf32> -> vector<32x384xf32>
    %20 = arith.addf %16, %19 : vector<32x384xf32>
    %c0_9 = arith.constant 0 : index
    %c0_10 = arith.constant 0 : index
    %21 = vector.load %arg6[%c0_9, %c0_10] : memref<32x1xf32, #tpu.memory_space<vmem>>, vector<32x1xf32>
    %22 = vector.broadcast %21 : vector<32x1xf32> to vector<32x384xf32>
    %23 = arith.addf %20, %22 : vector<32x384xf32>
    %cst_11 = arith.constant 0.000000e+00 : f32
    %24 = vector.broadcast %cst_11 : f32 to vector<32x384xf32>
    %25 = arith.maximumf %23, %24 : vector<32x384xf32>
    %c0_12 = arith.constant 0 : index
    %c0_13 = arith.constant 0 : index
    %26 = vector.load %arg7[%c0_12, %c0_13] : memref<32x32xbf16, #tpu.memory_space<vmem>>, vector<32x32xbf16>
    %27 = arith.truncf %25 : vector<32x384xf32> to vector<32x384xbf16>
    %cst_14 = arith.constant dense<0.000000e+00> : vector<32x384xf32>
    %28 = tpu.matmul %26, %27, %cst_14 {dimension_numbers = #tpu.dot_dimension_numbers<[1], [0], [0], [1], [0, 0, 1, 1], [], []>} : vector<32x32xbf16>, vector<32x384xbf16>, vector<32x384xf32> -> vector<32x384xf32>
    %c0_15 = arith.constant 0 : index
    %c0_16 = arith.constant 0 : index
    %29 = vector.load %arg8[%c0_15, %c0_16] : memref<32x1xf32, #tpu.memory_space<vmem>>, vector<32x1xf32>
    %30 = vector.broadcast %29 : vector<32x1xf32> to vector<32x384xf32>
    %31 = arith.addf %28, %30 : vector<32x384xf32>
    %32 = tpu.iota {dimensions = array<i32: 1>} : vector<384x64xi32>
    %c0_17 = arith.constant 0 : index
    %c0_18 = arith.constant 0 : index
    %33 = vector.load %arg2[%c0_17, %c0_18] : memref<384x1xi32, #tpu.memory_space<vmem>>, vector<384x1xi32>
    %34 = vector.broadcast %33 : vector<384x1xi32> to vector<384x64xi32>
    %35 = arith.cmpi eq, %32, %34 : vector<384x64xi32>
    %36 = arith.extui %35 : vector<384x64xi1> to vector<384x64xi32>
    %37 = arith.sitofp %36 : vector<384x64xi32> to vector<384x64xf32>
    %38 = arith.truncf %37 : vector<384x64xf32> to vector<384x64xbf16>
    %39 = arith.truncf %31 : vector<32x384xf32> to vector<32x384xbf16>
    %cst_19 = arith.constant dense<0.000000e+00> : vector<32x64xf32>
    %40 = tpu.matmul %39, %38, %cst_19 {dimension_numbers = #tpu.dot_dimension_numbers<[1], [0], [0], [1], [0, 0, 1, 1], [], []>} : vector<32x384xbf16>, vector<384x64xbf16>, vector<32x64xf32> -> vector<32x64xf32>
    %c0_20 = arith.constant 0 : index
    %c0_21 = arith.constant 0 : index
    %41 = vector.load %arg10[%c0_20, %c0_21] : memref<32x16xbf16, #tpu.memory_space<vmem>>, vector<32x16xbf16>
    %c0_22 = arith.constant 0 : index
    %c0_23 = arith.constant 0 : index
    %42 = vector.load %arg9[%c0_22, %c0_23] : memref<16x64xbf16, #tpu.memory_space<vmem>>, vector<16x64xbf16>
    %cst_24 = arith.constant dense<0.000000e+00> : vector<32x64xf32>
    %43 = tpu.matmul %41, %42, %cst_24 {dimension_numbers = #tpu.dot_dimension_numbers<[1], [0], [0], [1], [0, 0, 1, 1], [], []>} : vector<32x16xbf16>, vector<16x64xbf16>, vector<32x64xf32> -> vector<32x64xf32>
    %c0_25 = arith.constant 0 : index
    %c0_26 = arith.constant 0 : index
    %44 = vector.load %arg11[%c0_25, %c0_26] : memref<32x32xbf16, #tpu.memory_space<vmem>>, vector<32x32xbf16>
    %45 = arith.truncf %40 : vector<32x64xf32> to vector<32x64xbf16>
    %cst_27 = arith.constant dense<0.000000e+00> : vector<32x64xf32>
    %46 = tpu.matmul %44, %45, %cst_27 {dimension_numbers = #tpu.dot_dimension_numbers<[1], [0], [0], [1], [0, 0, 1, 1], [], []>} : vector<32x32xbf16>, vector<32x64xbf16>, vector<32x64xf32> -> vector<32x64xf32>
    %47 = arith.addf %43, %46 : vector<32x64xf32>
    %c0_28 = arith.constant 0 : index
    %c0_29 = arith.constant 0 : index
    %48 = vector.load %arg12[%c0_28, %c0_29] : memref<32x1xf32, #tpu.memory_space<vmem>>, vector<32x1xf32>
    %49 = vector.broadcast %48 : vector<32x1xf32> to vector<32x64xf32>
    %50 = arith.addf %47, %49 : vector<32x64xf32>
    %cst_30 = arith.constant 0.000000e+00 : f32
    %51 = vector.broadcast %cst_30 : f32 to vector<32x64xf32>
    %52 = arith.maximumf %50, %51 : vector<32x64xf32>
    %c0_31 = arith.constant 0 : index
    %c0_32 = arith.constant 0 : index
    %53 = vector.load %arg13[%c0_31, %c0_32] : memref<32x32xbf16, #tpu.memory_space<vmem>>, vector<32x32xbf16>
    %54 = arith.truncf %52 : vector<32x64xf32> to vector<32x64xbf16>
    %cst_33 = arith.constant dense<0.000000e+00> : vector<32x64xf32>
    %55 = tpu.matmul %53, %54, %cst_33 {dimension_numbers = #tpu.dot_dimension_numbers<[1], [0], [0], [1], [0, 0, 1, 1], [], []>} : vector<32x32xbf16>, vector<32x64xbf16>, vector<32x64xf32> -> vector<32x64xf32>
    %c0_34 = arith.constant 0 : index
    %c0_35 = arith.constant 0 : index
    %56 = vector.load %arg14[%c0_34, %c0_35] : memref<32x1xf32, #tpu.memory_space<vmem>>, vector<32x1xf32>
    %57 = vector.broadcast %56 : vector<32x1xf32> to vector<32x64xf32>
    %58 = arith.addf %55, %57 : vector<32x64xf32>
    %c0_36 = arith.constant 0 : index
    %c0_37 = arith.constant 0 : index
    %59 = vector.load %arg15[%c0_36, %c0_37] : memref<32x64xf32, #tpu.memory_space<vmem>>, vector<32x64xf32>
    tpu.vector_store %arg15[%c0_36, %c0_37], %58 {strides = array<i32>} : memref<32x64xf32, #tpu.memory_space<vmem>>, vector<32x64xf32>,
    return
  }
  func.func @transform_0(%arg0: i32) -> (i32, i32, i32) {
    %c0_i32 = arith.constant 0 : i32
    %c0_i32_0 = arith.constant 0 : i32
    %c0_i32_1 = arith.constant 0 : i32
    return %arg0, %c0_i32, %c0_i32_0 : i32, i32, i32
  }
  func.func @transform_1(%arg0: i32) -> (i32, i32) {
    %c0_i32 = arith.constant 0 : i32
    %c0_i32_0 = arith.constant 0 : i32
    return %arg0, %c0_i32 : i32, i32
  }
  func.func @transform_2(%arg0: i32) -> (i32, i32) {
    %c0_i32 = arith.constant 0 : i32
    %c0_i32_0 = arith.constant 0 : i32
    return %c0_i32, %arg0 : i32, i32
  }
  func.func @transform_3(%arg0: i32) -> (i32, i32) {
    %c0_i32 = arith.constant 0 : i32
    %c0_i32_0 = arith.constant 0 : i32
    %c0_i32_1 = arith.constant 0 : i32
    return %c0_i32, %c0_i32_0 : i32, i32
  }
  func.func @transform_4(%arg0: i32) -> (i32, i32) {
    %c0_i32 = arith.constant 0 : i32
    %c0_i32_0 = arith.constant 0 : i32
    %c0_i32_1 = arith.constant 0 : i32
    return %c0_i32, %c0_i32_0 : i32, i32
  }
  func.func @transform_5(%arg0: i32) -> (i32, i32) {
    %c0_i32 = arith.constant 0 : i32
    %c0_i32_0 = arith.constant 0 : i32
    %c0_i32_1 = arith.constant 0 : i32
    return %c0_i32, %c0_i32_0 : i32, i32
  }
  func.func @transform_6(%arg0: i32) -> (i32, i32) {
    %c0_i32 = arith.constant 0 : i32
    %c0_i32_0 = arith.constant 0 : i32
    %c0_i32_1 = arith.constant 0 : i32
    return %c0_i32, %c0_i32_0 : i32, i32
  }
  func.func @transform_7(%arg0: i32) -> (i32, i32) {
    %c0_i32 = arith.constant 0 : i32
    %c0_i32_0 = arith.constant 0 : i32
    %c0_i32_1 = arith.constant 0 : i32
    return %c0_i32, %c0_i32_0 : i32, i32
  }
  func.func @transform_8(%arg0: i32) -> (i32, i32) {
    %c0_i32 = arith.constant 0 : i32
    %c0_i32_0 = arith.constant 0 : i32
    %c0_i32_1 = arith.constant 0 : i32
    return %c0_i32, %c0_i32_0 : i32, i32
  }
  func.func @transform_9(%arg0: i32) -> (i32, i32) {
    %c0_i32 = arith.constant 0 : i32
    %c0_i32_0 = arith.constant 0 : i32
    %c0_i32_1 = arith.constant 0 : i32
    return %c0_i32, %c0_i32_0 : i32, i32
  }
  func.func @transform_10(%arg0: i32) -> (i32, i32) {
    %c0_i32 = arith.constant 0 : i32
    %c0_i32_0 = arith.constant 0 : i32
    %c0_i32_1 = arith.constant 0 : i32
    return %c0_i32, %c0_i32_0 : i32, i32
  }
  func.func @transform_11(%arg0: i32) -> (i32, i32) {
    %c0_i32 = arith.constant 0 : i32
    %c0_i32_0 = arith.constant 0 : i32
    %c0_i32_1 = arith.constant 0 : i32
    return %c0_i32, %c0_i32_0 : i32, i32
  }
  func.func @transform_12(%arg0: i32) -> (i32, i32) {
    %c0_i32 = arith.constant 0 : i32
    %c0_i32_0 = arith.constant 0 : i32
    %c0_i32_1 = arith.constant 0 : i32
    return %c0_i32, %c0_i32_0 : i32, i32
  }
  func.func @transform_13(%arg0: i32) -> (i32, i32) {
    %c0_i32 = arith.constant 0 : i32
    %c0_i32_0 = arith.constant 0 : i32
    %c0_i32_1 = arith.constant 0 : i32
    return %c0_i32, %c0_i32_0 : i32, i32
  }
  func.func @transform_14(%arg0: i32) -> (i32, i32) {
    %c0_i32 = arith.constant 0 : i32
    %c0_i32_0 = arith.constant 0 : i32
    %c0_i32_1 = arith.constant 0 : i32
    return %c0_i32, %c0_i32_0 : i32, i32
  }
}

</mosaic_0001>

<bundles_post_ra>
// kernel: tpu_custom_call.1
= control target key start
LH: loop header
LB: loop body
LE: loop exit
PB: predicated region body
PF: predicated region fallthrough
CT: control target
= control target key end

     0   :  { %vm392_vm0 = vcmask 1043456   ;;  %v50_v3 = vlaneseq  ;;  %v2933_v4 = vmov 0   ;;  %vm385_vm1 = vcmask 64512   ;;  %s2918_s0 = inlined_call_operand.vmem [shape: s32[1,1,768], index: 0, kind: input, shape index: {}]   ;;  %s2919_s1 = inlined_call_operand.vmem [shape: s32[384,1], index: 1, kind: input, shape index: {}]   ;;  %s2920_s2 = inlined_call_operand.vmem [shape: bf16[8,384], index: 2, kind: input, shape index: {}]   ;;  %s2921_s3 = inlined_call_operand.vmem [shape: bf16[32,128], index: 3, kind: input, shape index: {}]   ;;  %s2922_s4 = inlined_call_operand.vmem [shape: bf16[32,8], index: 4, kind: input, shape index: {}]   ;;  %s2923_s5 = inlined_call_operand.vmem [shape: f32[32,1], index: 5, kind: input, shape index: {}]   ;;  %s2924_s6 = inlined_call_operand.vmem [shape: bf16[32,32], index: 6, kind: input, shape index: {}]   ;;  %s2925_s7 = inlined_call_operand.vmem [shape: f32[32,1], index: 7, kind: input, shape index: {}]   ;;  %s2926_s8 = inlined_call_operand.vmem [shape: bf16[16,64], index: 8, kind: input, shape index: {}]   ;;  %s2927_s9 = inlined_call_operand.vmem [shape: bf16[32,16], index: 9, kind: input, shape index: {}]   ;;  %s2928_s10 = inlined_call_operand.vmem [shape: bf16[32,32], index: 10, kind: input, shape index: {}]   ;;  %s2929_s11 = inlined_call_operand.vmem [shape: f32[32,1], index: 11, kind: input, shape index: {}]   ;;  %s2930_s12 = inlined_call_operand.vmem [shape: bf16[32,32], index: 12, kind: input, shape index: {}]   ;;  %s2931_s13 = inlined_call_operand.vmem [shape: f32[32,1], index: 13, kind: input, shape index: {}]   ;;  %s2932_s14 = inlined_call_operand.hbm [shape: f32[32,64], index: 14, kind: output, shape index: {}]  }
   0x1   :  { %v620_v0 = vld [vmem:[%s2923_s5 + $0x10] sm:$0xff]  ;;  %v365_v1 = vld [vmem:[%s2920_s2] sm:$0xff]  ;;  %1953 = vset.pattern.permute.xlu0 %v2933_v4  ;;  %1954 = vset.pattern.permute.xlu1 %v2933_v4  ;;  %v621_v7 = vld [vmem:[%s2923_s5 + $0x18] sm:$0xff]  ;;  %v2934_v34 = vmov 1.0|1.0  }
   0x2   :  { %v618_v2 = vld [vmem:[%s2923_s5] sm:$0xff]  ;;  %v1633_v5 = vcombine.high %v365_v1, %v365_v1  ;;  %v1632_v6 = vcombine.low %v365_v1, %v365_v1  ;;  %634 = vperm.xlu0 %1953, %v620_v0   ;;  %v1958_v8 = vld [vmem:[%s2920_s2 + $0x8] ss:$0 sps:$4 sm:$0xff]   ;;  %v2091_v9 = vshrl.u32 %v50_v3, 7  ;;  %434 = vmatprep.mubr.bf16.mxu0 %v2933_v4  ;;  %v851_v22 = vld [vmem:[%s2919_s1 + $0xf0] sm:$0xff] }
   0x3   :  { %624 = vperm.xlu1 %1954, %v618_v2   ;;  %v1957_v11 = vld [vmem:[%s2922_s4] sm:$0xff]   ;;  %v619_v12 = vld [vmem:[%s2923_s5 + $0x8] sm:$0xff]  ;;  %1947 = vmatprep.subr.msk.bf16.mxu1 %vm392_vm0, %v1958_v8  ;;  %v400_v14 = vsel %vm392_vm0, %v1958_v8, 0  ;;  %v852_v24 = vld [vmem:[%s2919_s1 + $0xf8] sm:$0xff] }
   0x4   :  { %1635 = vmatprep.subr.msk.bf16.mxu0 %vm392_vm0, %v1633_v5  ;;  %v394_v10 = vsel %vm392_vm0, %v1632_v6, 0  ;;  %v49_v13 = vld [vmem:[%s2918_s0] sm:$0x3f]  ;;  %v73_v15 = vsub.s32 1, %v2091_v9  ;;  %v1959_v16 = vld [vmem:[%s2922_s4 + $0x8] sm:$0xff]   ;;  %1872 = vmatpush3.bf16.msra.mxu1 %v400_v14  ;;  %v65_v17 = vadd.s32 112, %v2091_v9 }
   0x5   :  { %417 = vmatpush1.bf16.msra.mxu0 %v394_v10  ;;  %1873 = vmatprep.mubr.msk.bf16.mxu1 %vm385_vm1, %v1957_v11  ;;  %v127_v18 = vrot.slane %v49_v13, 3  ;;  %v77_v19 = vsub.s32 2, %v2091_v9  ;;  %v66_v20 = vadd.s32 120, %v2091_v9  ;;  %v69_v25 = vsub.s32 0, %v2091_v9  ;;  %v835_v31 = vld [vmem:[%s2919_s1 + $0x70] sm:$0xff]  ;;  %v836_v32 = vld [vmem:[%s2919_s1 + $0x78] sm:$0xff] }
   0x6   :  { %639 = vperm.xlu0 %1953, %v621_v7   ;;  %v2115_v21 = vrot.slane %v49_v13, %v73_v15  ;;  %v63_v33 = vadd.s32 96, %v2091_v9  ;;  %v64_v36 = vadd.s32 104, %v2091_v9  ;;  %v849_v37 = vld [vmem:[%s2919_s1 + $0xe0] sm:$0xff]  ;;  %v850_v38 = vld [vmem:[%s2919_s1 + $0xe8] sm:$0xff]  ;;  %v2196_v42 = vadd.s32 80, %v2091_v9  ;;  %v847_v43 = vld [vmem:[%s2919_s1 + $0xd0] sm:$0xff] }
   0x7   :  { %629 = vperm.xlu1 %1954, %v619_v12   ;;  %v128_v23 = vadd.s32 64, %v127_v18  ;;  %v2125_v26 = vrot.slane %v49_v13, %v77_v19  ;;  %1874 = vmatmul.mubr.msk.bf16.vlgmr.msra.gmra.mxu1 %vm385_vm1, %v1959_v16  ;;  %v2137_v29 = vrot.slane %v49_v13, %v69_v25  ;;  %v2172_v39 = vld [vmem:[%s2921_s3] sm:$0xff]   ;;  %v834_v41 = vld [vmem:[%s2919_s1 + $0x68] sm:$0xff]  ;;  %v62_v45 = vadd.s32 88, %v2091_v9  ;;  %v848_v46 = vld [vmem:[%s2919_s1 + $0xd8] sm:$0xff] }
   0x8   :  { %1636 = vmatmul.mubr.msk.bf16.vlgmr.msra.gmra.mxu0 %vm385_vm1, %v1957_v11  ;;  %vm122_vm2 = vcmp.eq.s32.totalorder %v65_v17, %v2115_v21  ;;  %vm125_vm3 = vcmp.eq.s32.totalorder %v66_v20, %v2115_v21  ;;  %v833_v40 = vld [vmem:[%s2919_s1 + $0x60] sm:$0xff]  ;;  %1893 = vmatprep.mubr.bf16.mxu1 %v2172_v39  ;;  %v831_v48 = vld [vmem:[%s2919_s1 + $0x50] sm:$0xff]  ;;  %v832_v49 = vld [vmem:[%s2919_s1 + $0x58] sm:$0xff]  ;;  %v2243_v50 = vadd.s32 8, %v2091_v9  ;;  %v59_v53 = vadd.s32 64, %v2091_v9 }
   0x9   :  { %v2129_v27 = vrot.slane %v128_v23, %v73_v15  ;;  %v2131_v28 = vrot.slane %v128_v23, %v77_v19  ;;  %444 = vmatprep.mubr.bf16.mxu0 %v2933_v4  ;;  %v2139_v30 = vrot.slane %v128_v23, %v69_v25  ;;  %vm123_vm7 = vcmp.eq.s32.totalorder %v65_v17, %v2125_v26  ;;  %v845_v52 = vld [vmem:[%s2919_s1 + $0xc0] sm:$0xff]  ;;  %v846_v55 = vld [vmem:[%s2919_s1 + $0xc8] sm:$0xff]  ;;  %v867_v58 = vld [vmem:[%s2919_s1 + $0x170] sm:$0xff] }
   0xa   :  { %960 = vperm.xlu0 %1953, %v851_v22   ;;  %vm126_vm10 = vcmp.eq.s32.totalorder %v66_v20, %v2125_v26  ;;  %vm121_vm14 = vcmp.eq.s32.totalorder %v65_v17, %v2137_v29  ;;  %v60_v54 = vadd.s32 72, %v2091_v9  ;;  %v868_v59 = vld [vmem:[%s2919_s1 + $0x178] sm:$0xff]  ;;  %v829_v60 = vld [vmem:[%s2919_s1 + $0x40] sm:$0xff]  ;;  %v830_v61 = vld [vmem:[%s2919_s1 + $0x48] sm:$0xff]  ;;  %v57_v62 = vadd.s32 48, %v2091_v9 }
   0xb   :  { %963 = vperm.xlu1 %1954, %v852_v24   ;;  %vm184_vm4 = vcmp.eq.s32.totalorder %v65_v17, %v2129_v27  ;;  %vm187_vm5 = vcmp.eq.s32.totalorder %v66_v20, %v2129_v27  ;;  %vm185_vm8 = vcmp.eq.s32.totalorder %v65_v17, %v2131_v28  ;;  %vm188_vm11 = vcmp.eq.s32.totalorder %v66_v20, %v2131_v28  ;;  %v843_v63 = vld [vmem:[%s2919_s1 + $0xb0] sm:$0xff]  ;;  %v844_v2 = vld [vmem:[%s2919_s1 + $0xb8] sm:$0xff]  ;;  %v865_v5 = vld [vmem:[%s2919_s1 + $0x160] sm:$0xff] }
   0xc   :  { %vm232_vm6 = vmor %vm122_vm2, %vm184_vm4  ;;  %vm183_vm15 = vcmp.eq.s32.totalorder %v65_v17, %v2139_v30  ;;  %vm124_vm2 = vcmp.eq.s32.totalorder %v66_v20, %v2137_v29  ;;  %v58_v1 = vadd.s32 56, %v2091_v9  ;;  %v866_v6 = vld [vmem:[%s2919_s1 + $0x168] sm:$0xff]  ;;  %v55_v7 = vadd.s32 32, %v2091_v9  ;;  %v827_v11 = vld [vmem:[%s2919_s1 + $0x30] sm:$0xff] }
   0xd   :  { %vm235_vm9 = vmor %vm125_vm3, %vm187_vm5  ;;  %vm186_vm3 = vcmp.eq.s32.totalorder %v66_v20, %v2139_v30  ;;  %v56_v10 = vadd.s32 40, %v2091_v9  ;;  %v828_v12 = vld [vmem:[%s2919_s1 + $0x38] sm:$0xff]  ;;  %v841_v13 = vld [vmem:[%s2919_s1 + $0xa0] sm:$0xff]  ;;  %v53_v15 = vadd.s32 16, %v2091_v9  ;;  %v54_v18 = vadd.s32 24, %v2091_v9 }
   0xe   :  { %vm1642_vm12 = vmpackc.low %vm235_vm9, %vm232_vm6  ;;  %912 = vperm.xlu0 %1953, %v835_v31   ;;  %vm116_vm6 = vcmp.eq.s32.totalorder %v63_v33, %v2115_v21  ;;  %vm181_vm9 = vcmp.eq.s32.totalorder %v64_v36, %v2129_v27  ;;  %v842_v14 = vld [vmem:[%s2919_s1 + $0xa8] sm:$0xff]  ;;  %v864_v19 = vld [vmem:[%s2919_s1 + $0x158] sm:$0xff] }
   0xf   :  { %915 = vperm.xlu1 %1954, %v836_v32   ;;  %1643 = vmatprep.subr.msk.bf16.mxu0 %vm1642_vm12, %v2934_v34  ;;  %vm2153_vm13 = vmor %vm123_vm7, %vm185_vm8  ;;  %vm178_vm7 = vcmp.eq.s32.totalorder %v63_v33, %v2129_v27  ;;  %vm117_vm12 = vcmp.eq.s32.totalorder %v63_v33, %v2125_v26  ;;  %v825_v20 = vld [vmem:[%s2919_s1 + $0x20] sm:$0xff]  ;;  %v826_v22 = vld [vmem:[%s2919_s1 + $0x28] sm:$0xff] }
  0x10   :  { %vm236_vm0 = vmor %vm126_vm10, %vm188_vm11  ;;  %1637 = vmatmul.mubr.msk.bf16.gmra.mxu0 %vm385_vm1, %v1959_v16  ;;  %vm119_vm1 = vcmp.eq.s32.totalorder %v64_v36, %v2115_v21  ;;  %v863_v16 = vld [vmem:[%s2919_s1 + $0x150] sm:$0xff]  ;;  %v840_v24 = vld [vmem:[%s2919_s1 + $0x98] sm:$0xff] }
  0x11   :  { %vm1674_vm4 = vmpackc.low %vm236_vm0, %vm2153_vm13  ;;  %548 = vmatprep.mubr.bf16.mxu0 %v2933_v4  ;;  %vm179_vm13 = vcmp.eq.s32.totalorder %v63_v33, %v2131_v28  ;;  %vm182_vm0 = vcmp.eq.s32.totalorder %v64_v36, %v2131_v28  ;;  %v839_v23 = vld [vmem:[%s2919_s1 + $0x90] sm:$0xff]  ;;  %v861_v25 = vld [vmem:[%s2919_s1 + $0x140] sm:$0xff] }
  0x12   :  { %1877 = vmatprep.subr.msk.bf16.mxu1 %vm1674_vm4, %v2934_v34  ;;  %vm231_vm5 = vmor %vm121_vm14, %vm183_vm15  ;;  %954 = vperm.xlu0 %1953, %v849_v37   ;;  %vm120_vm15 = vcmp.eq.s32.totalorder %v64_v36, %v2125_v26  ;;  %v862_v31 = vld [vmem:[%s2919_s1 + $0x148] sm:$0xff]  ;;  %v823_v32 = vld [vmem:[%s2919_s1 + $0x10] sm:$0xff] }
  0x13   :  { %vm234_vm8 = vmor %vm124_vm2, %vm186_vm3  ;;  %1878 = vmatpush3.bf16.msk.msra.mxu1 %vm1674_vm4, %v2934_v34  ;;  %957 = vperm.xlu1 %1954, %v850_v38   ;;  %vm115_vm4 = vcmp.eq.s32.totalorder %v63_v33, %v2137_v29 }
  0x14   :  { %vm1644_vm10 = vmpackc.low %vm234_vm8, %vm231_vm5  ;;  %vm177_vm5 = vcmp.eq.s32.totalorder %v63_v33, %v2139_v30  ;;  %vm180_vm8 = vcmp.eq.s32.totalorder %v64_v36, %v2139_v30  ;;  %v824_v33 = vld [vmem:[%s2919_s1 + $0x18] sm:$0xff] }
  0x15   :  { %1645 = vmatpush1.bf16.msk.msra.mxu0 %vm1644_vm10, %v2934_v34  ;;  %vm226_vm11 = vmor %vm116_vm6, %vm178_vm7  ;;  %vm118_vm7 = vcmp.eq.s32.totalorder %v64_v36, %v2137_v29  ;;  %vm142_vm10 = vcmp.eq.s32.totalorder %v2091_v9, %v2129_v27 }
  0x16   :  { %vm229_vm14 = vmor %vm119_vm1, %vm181_vm9  ;;  %906 = vperm.xlu0 %1953, %v833_v40   ;;  %vm80_vm9 = vcmp.eq.s32.totalorder %v2091_v9, %v2115_v21 }
  0x17   :  { %vm1646_vm2 = vmpackc.low %vm229_vm14, %vm226_vm11  ;;  %909 = vperm.xlu1 %1954, %v834_v41   ;;  %vm172_vm14 = vcmp.eq.s32.totalorder %v2196_v42, %v2129_v27  ;;  %vm169_vm11 = vcmp.eq.s32.totalorder %v60_v54, %v2129_v27 }
  0x18   :  { %1647 = vmatprep.subr.msk.bf16.mxu0 %vm1646_vm2, %v2934_v34  ;;  %vm2202_vm3 = vmor %vm117_vm12, %vm179_vm13  ;;  %vm110_vm13 = vcmp.eq.s32.totalorder %v2196_v42, %v2115_v21  ;;  %vm175_vm2 = vcmp.eq.s32.totalorder %v62_v45, %v2129_v27 }
  0x19   :  { %vm2212_vm6 = vmor %vm120_vm15, %vm182_vm0  ;;  %vm113_vm0 = vcmp.eq.s32.totalorder %v62_v45, %v2115_v21 }
  0x1a   :  { %vm1676_vm1 = vmpackc.low %vm2212_vm6, %vm2202_vm3  ;;  %948 = vperm.xlu0 %1953, %v847_v43   ;;  %vm173_vm6 = vcmp.eq.s32.totalorder %v2196_v42, %v2131_v28 }
  0x1b   :  { %1879 = vmatprep.subr.msk.bf16.mxu1 %vm1676_vm1, %v2934_v34  ;;  %vm225_vm12 = vmor %vm115_vm4, %vm177_vm5  ;;  %951 = vperm.xlu1 %1954, %v848_v46   ;;  %vm111_vm5 = vcmp.eq.s32.totalorder %v2196_v42, %v2125_v26 }
  0x1c   :  { %vm228_vm15 = vmor %vm118_vm7, %vm180_vm8  ;;  %1880 = vmatpush3.bf16.msk.msra.mxu1 %vm1676_vm1, %v2934_v34  ;;  %vm114_vm8 = vcmp.eq.s32.totalorder %v62_v45, %v2125_v26  ;;  %vm176_vm1 = vcmp.eq.s32.totalorder %v62_v45, %v2131_v28 }
  0x1d   :  { %vm1648_vm3 = vmpackc.low %vm228_vm15, %vm225_vm12 }
  0x1e   :  { %1649 = vmatpush1.bf16.msk.msra.mxu0 %vm1648_vm3, %v2934_v34  ;;  %vm2246_vm4 = vmor %vm110_vm13, %vm172_vm14  ;;  %900 = vperm.xlu0 %1953, %v831_v48   ;;  %vm109_vm13 = vcmp.eq.s32.totalorder %v2196_v42, %v2137_v29  ;;  %vm112_vm14 = vcmp.eq.s32.totalorder %v62_v45, %v2137_v29  ;;  %vm170_vm3 = vcmp.eq.s32.totalorder %v60_v54, %v2131_v28 }
  0x1f   :  { %vm223_vm7 = vmor %vm113_vm0, %vm175_vm2  ;;  %903 = vperm.xlu1 %1954, %v832_v49   ;;  %vm171_vm0 = vcmp.eq.s32.totalorder %v2196_v42, %v2139_v30  ;;  %vm174_vm2 = vcmp.eq.s32.totalorder %v62_v45, %v2139_v30 }
  0x20   :  { %vm1650_vm12 = vmpackc.low %vm223_vm7, %vm2246_vm4 }
  0x21   :  { %1651 = vmatprep.subr.msk.bf16.mxu0 %vm1650_vm12, %v2934_v34  ;;  %vm2273_vm15 = vmor %vm111_vm5, %vm173_vm6  ;;  %vm166_vm12 = vcmp.eq.s32.totalorder %v59_v53, %v2129_v27  ;;  %vm107_vm5 = vcmp.eq.s32.totalorder %v60_v54, %v2115_v21  ;;  %vm108_vm6 = vcmp.eq.s32.totalorder %v60_v54, %v2125_v26 }
  0x22   :  { %vm2288_vm7 = vmor %vm114_vm8, %vm176_vm1  ;;  %942 = vperm.xlu0 %1953, %v845_v52  }
  0x23   :  { %vm1678_vm8 = vmpackc.low %vm2288_vm7, %vm2273_vm15  ;;  %945 = vperm.xlu1 %1954, %v846_v55   ;;  %vm104_vm7 = vcmp.eq.s32.totalorder %v59_v53, %v2115_v21 }
  0x24   :  { %1881 = vmatprep.subr.msk.bf16.mxu1 %vm1678_vm8, %v2934_v34  ;;  %vm219_vm15 = vmor %vm109_vm13, %vm171_vm0 }
  0x25   :  { %vm222_vm1 = vmor %vm112_vm14, %vm174_vm2  ;;  %1882 = vmatpush3.bf16.msk.msra.mxu1 %vm1678_vm8, %v2934_v34  ;;  %vm105_vm14 = vcmp.eq.s32.totalorder %v59_v53, %v2125_v26  ;;  %vm167_vm2 = vcmp.eq.s32.totalorder %v59_v53, %v2131_v28 }
  0x26   :  { %vm1652_vm13 = vmpackc.low %vm222_vm1, %vm219_vm15  ;;  %1008 = vperm.xlu0 %1953, %v867_v58   ;;  %vm103_vm1 = vcmp.eq.s32.totalorder %v59_v53, %v2137_v29  ;;  %vm106_vm15 = vcmp.eq.s32.totalorder %v60_v54, %v2137_v29 }
  0x27   :  { %1653 = vmatpush1.bf16.msk.msra.mxu0 %vm1652_vm13, %v2934_v34  ;;  %vm214_vm0 = vmor %vm104_vm7, %vm166_vm12  ;;  %1011 = vperm.xlu1 %1954, %v868_v59  }
  0x28   :  { %vm217_vm8 = vmor %vm107_vm5, %vm169_vm11  ;;  %vm165_vm11 = vcmp.eq.s32.totalorder %v59_v53, %v2139_v30 }
  0x29   :  { %vm1654_vm4 = vmpackc.low %vm217_vm8, %vm214_vm0  ;;  %vm98_vm0 = vcmp.eq.s32.totalorder %v57_v62, %v2115_v21 }
  0x2a   :  { %1655 = vmatprep.subr.msk.bf16.mxu0 %vm1654_vm4, %v2934_v34  ;;  %vm2348_vm12 = vmor %vm105_vm14, %vm167_vm2  ;;  %894 = vperm.xlu0 %1953, %v829_v60   ;;  %vm168_vm4 = vcmp.eq.s32.totalorder %v60_v54, %v2139_v30  ;;  %vm160_vm14 = vcmp.eq.s32.totalorder %v57_v62, %v2129_v27 }
  0x2b   :  { %vm218_vm5 = vmor %vm108_vm6, %vm170_vm3  ;;  %897 = vperm.xlu1 %1954, %v830_v61   ;;  %vm101_vm3 = vcmp.eq.s32.totalorder %v58_v1, %v2115_v21  ;;  %vm163_vm6 = vcmp.eq.s32.totalorder %v58_v1, %v2129_v27 }
  0x2c   :  { %vm1680_vm7 = vmpackc.low %vm218_vm5, %vm2348_vm12 }
  0x2d   :  { %1883 = vmatprep.subr.msk.bf16.mxu1 %vm1680_vm7, %v2934_v34  ;;  %vm213_vm13 = vmor %vm103_vm1, %vm165_vm11  ;;  %vm99_vm1 = vcmp.eq.s32.totalorder %v57_v62, %v2125_v26  ;;  %vm161_vm11 = vcmp.eq.s32.totalorder %v57_v62, %v2131_v28 }
  0x2e   :  { %vm216_vm2 = vmor %vm106_vm15, %vm168_vm4  ;;  %1884 = vmatpush3.bf16.msk.msra.mxu1 %vm1680_vm7, %v2934_v34  ;;  %936 = vperm.xlu0 %1953, %v843_v63   ;;  %vm102_vm15 = vcmp.eq.s32.totalorder %v58_v1, %v2125_v26  ;;  %vm164_vm4 = vcmp.eq.s32.totalorder %v58_v1, %v2131_v28 }
  0x2f   :  { %vm1656_vm8 = vmpackc.low %vm216_vm2, %vm213_vm13  ;;  %939 = vperm.xlu1 %1954, %v844_v2  }
  0x30   :  { %1657 = vmatpush1.bf16.msk.msra.mxu0 %vm1656_vm8, %v2934_v34  ;;  %vm208_vm12 = vmor %vm98_vm0, %vm160_vm14  ;;  %vm97_vm0 = vcmp.eq.s32.totalorder %v57_v62, %v2137_v29  ;;  %vm159_vm14 = vcmp.eq.s32.totalorder %v57_v62, %v2139_v30 }
  0x31   :  { %vm211_vm5 = vmor %vm101_vm3, %vm163_vm6  ;;  %vm100_vm3 = vcmp.eq.s32.totalorder %v58_v1, %v2137_v29  ;;  %vm162_vm6 = vcmp.eq.s32.totalorder %v58_v1, %v2139_v30 }
  0x32   :  { %vm1658_vm7 = vmpackc.low %vm211_vm5, %vm208_vm12  ;;  %1002 = vperm.xlu0 %1953, %v865_v5  }
  0x33   :  { %1659 = vmatprep.subr.msk.bf16.mxu0 %vm1658_vm7, %v2934_v34  ;;  %vm2381_vm13 = vmor %vm99_vm1, %vm161_vm11  ;;  %1005 = vperm.xlu1 %1954, %v866_v6   ;;  %vm92_vm1 = vcmp.eq.s32.totalorder %v55_v7, %v2115_v21  ;;  %vm154_vm11 = vcmp.eq.s32.totalorder %v55_v7, %v2129_v27 }
  0x34   :  { %vm212_vm2 = vmor %vm102_vm15, %vm164_vm4  ;;  %vm95_vm15 = vcmp.eq.s32.totalorder %v56_v10, %v2115_v21  ;;  %vm157_vm4 = vcmp.eq.s32.totalorder %v56_v10, %v2129_v27 }
  0x35   :  { %vm1682_vm8 = vmpackc.low %vm212_vm2, %vm2381_vm13 }
  0x36   :  { %1885 = vmatprep.subr.msk.bf16.mxu1 %vm1682_vm8, %v2934_v34  ;;  %vm207_vm12 = vmor %vm97_vm0, %vm159_vm14  ;;  %888 = vperm.xlu0 %1953, %v827_v11   ;;  %vm93_vm0 = vcmp.eq.s32.totalorder %v55_v7, %v2125_v26  ;;  %vm155_vm14 = vcmp.eq.s32.totalorder %v55_v7, %v2131_v28 }
  0x37   :  { %vm210_vm5 = vmor %vm100_vm3, %vm162_vm6  ;;  %1886 = vmatpush3.bf16.msk.msra.mxu1 %vm1682_vm8, %v2934_v34  ;;  %891 = vperm.xlu1 %1954, %v828_v12   ;;  %vm96_vm3 = vcmp.eq.s32.totalorder %v56_v10, %v2125_v26  ;;  %vm158_vm6 = vcmp.eq.s32.totalorder %v56_v10, %v2131_v28 }
  0x38   :  { %vm1660_vm7 = vmpackc.low %vm210_vm5, %vm207_vm12 }
  0x39   :  { %1661 = vmatpush1.bf16.msk.msra.mxu0 %vm1660_vm7, %v2934_v34  ;;  %vm202_vm13 = vmor %vm92_vm1, %vm154_vm11  ;;  %vm91_vm1 = vcmp.eq.s32.totalorder %v55_v7, %v2137_v29  ;;  %vm153_vm11 = vcmp.eq.s32.totalorder %v55_v7, %v2139_v30 }
  0x3a   :  { %vm205_vm2 = vmor %vm95_vm15, %vm157_vm4  ;;  %930 = vperm.xlu0 %1953, %v841_v13   ;;  %vm94_vm15 = vcmp.eq.s32.totalorder %v56_v10, %v2137_v29  ;;  %vm156_vm4 = vcmp.eq.s32.totalorder %v56_v10, %v2139_v30 }
  0x3b   :  { %vm1662_vm8 = vmpackc.low %vm205_vm2, %vm202_vm13  ;;  %933 = vperm.xlu1 %1954, %v842_v14  }
  0x3c   :  { %1663 = vmatprep.subr.msk.bf16.mxu0 %vm1662_vm8, %v2934_v34  ;;  %vm2420_vm12 = vmor %vm93_vm0, %vm155_vm14  ;;  %vm86_vm0 = vcmp.eq.s32.totalorder %v53_v15, %v2115_v21  ;;  %vm148_vm14 = vcmp.eq.s32.totalorder %v53_v15, %v2129_v27 }
  0x3d   :  { %vm206_vm5 = vmor %vm96_vm3, %vm158_vm6  ;;  %vm89_vm3 = vcmp.eq.s32.totalorder %v54_v18, %v2115_v21  ;;  %vm151_vm6 = vcmp.eq.s32.totalorder %v54_v18, %v2129_v27 }
  0x3e   :  { %vm1684_vm7 = vmpackc.low %vm206_vm5, %vm2420_vm12  ;;  %996 = vperm.xlu0 %1953, %v863_v16  }
  0x3f   :  { %1887 = vmatprep.subr.msk.bf16.mxu1 %vm1684_vm7, %v2934_v34  ;;  %vm201_vm13 = vmor %vm91_vm1, %vm153_vm11  ;;  %999 = vperm.xlu1 %1954, %v864_v19   ;;  %vm87_vm1 = vcmp.eq.s32.totalorder %v53_v15, %v2125_v26  ;;  %vm149_vm11 = vcmp.eq.s32.totalorder %v53_v15, %v2131_v28 }
  0x40   :  { %vm204_vm2 = vmor %vm94_vm15, %vm156_vm4  ;;  %1888 = vmatpush3.bf16.msk.msra.mxu1 %vm1684_vm7, %v2934_v34  ;;  %vm90_vm15 = vcmp.eq.s32.totalorder %v54_v18, %v2125_v26  ;;  %vm152_vm4 = vcmp.eq.s32.totalorder %v54_v18, %v2131_v28 }
  0x41   :  { %vm1664_vm8 = vmpackc.low %vm204_vm2, %vm201_vm13 }
  0x42   :  { %1665 = vmatpush1.bf16.msk.msra.mxu0 %vm1664_vm8, %v2934_v34  ;;  %vm196_vm12 = vmor %vm86_vm0, %vm148_vm14  ;;  %882 = vperm.xlu0 %1953, %v825_v20   ;;  %vm85_vm0 = vcmp.eq.s32.totalorder %v53_v15, %v2137_v29  ;;  %vm147_vm14 = vcmp.eq.s32.totalorder %v53_v15, %v2139_v30 }
  0x43   :  { %vm199_vm5 = vmor %vm89_vm3, %vm151_vm6  ;;  %885 = vperm.xlu1 %1954, %v826_v22   ;;  %vm88_vm3 = vcmp.eq.s32.totalorder %v54_v18, %v2137_v29  ;;  %vm150_vm6 = vcmp.eq.s32.totalorder %v54_v18, %v2139_v30 }
  0x44   :  { %vm1666_vm7 = vmpackc.low %vm199_vm5, %vm196_vm12 }
  0x45   :  { %1667 = vmatprep.subr.msk.bf16.mxu0 %vm1666_vm7, %v2934_v34  ;;  %vm197_vm13 = vmor %vm87_vm1, %vm149_vm11 }
  0x46   :  { %vm200_vm2 = vmor %vm90_vm15, %vm152_vm4  ;;  %924 = vperm.xlu0 %1953, %v839_v23   ;;  %vm2954_vm15 = vcmp.eq.s32.totalorder %v2243_v50, %v2129_v27  ;;  %vm2955_vm4 = vcmp.eq.s32.totalorder %v2243_v50, %v2115_v21  ;;  %v837_v21 = vld [vmem:[%s2919_s1 + $0x80] sm:$0xff]  ;;  %v838_v27 = vld [vmem:[%s2919_s1 + $0x88] sm:$0xff] }
  0x47   :  { %vm1686_vm8 = vmpackc.low %vm200_vm2, %vm197_vm13  ;;  %927 = vperm.xlu1 %1954, %v840_v24   ;;  %vm2959_vm2 = vcmp.eq.s32.totalorder %v2243_v50, %v2125_v26 }
  0x48   :  { %1889 = vmatprep.subr.msk.bf16.mxu1 %vm1686_vm8, %v2934_v34  ;;  %vm195_vm12 = vmor %vm85_vm0, %vm147_vm14  ;;  %vm2958_vm14 = vcmp.eq.s32.totalorder %v2243_v50, %v2131_v28 }
  0x49   :  { %vm198_vm1 = vmor %vm88_vm3, %vm150_vm6  ;;  %1890 = vmatpush3.bf16.msk.msra.mxu1 %vm1686_vm8, %v2934_v34  ;;  %vm2960_vm8 = vcmp.eq.s32.totalorder %v2091_v9, %v2139_v30 }
  0x4a   :  { %vm1668_vm11 = vmpackc.low %vm198_vm1, %vm195_vm12  ;;  %990 = vperm.xlu0 %1953, %v861_v25   ;;  %vm2961_vm12 = vcmp.eq.s32.totalorder %v2091_v9, %v2137_v29 }
  0x4b   :  { %1669 = vmatpush1.bf16.msk.msra.mxu0 %vm1668_vm11, %v2934_v34  ;;  %vm190_vm5 = vmor %vm80_vm9, %vm142_vm10  ;;  %993 = vperm.xlu1 %1954, %v862_v31   ;;  %vm2956_vm9 = vcmp.eq.s32.totalorder %v2091_v9, %v2131_v28  ;;  %vm2957_vm10 = vcmp.eq.s32.totalorder %v2091_v9, %v2125_v26  ;;  %v1961_v26 = vld [vmem:[%s2921_s3 + $0x8] sm:$0xff]   ;;  %vm2962_vm11 = vcmp.eq.s32.totalorder %v2243_v50, %v2139_v30  ;;  %v859_v9 = vld [vmem:[%s2919_s1 + $0x130] sm:$0xff] }
  0x4c   :  { %vm193_vm7 = vmor %vm2955_vm4, %vm2954_vm15  ;;  %v860_v28 = vld [vmem:[%s2919_s1 + $0x138] sm:$0xff] }
  0x4d   :  { %vm1670_vm13 = vmpackc.low %vm193_vm7, %vm190_vm5  ;;  %vm2963_vm5 = vcmp.eq.s32.totalorder %v2243_v50, %v2137_v29 }
  0x4e   :  { %1671 = vmatprep.subr.msk.bf16.mxu0 %vm1670_vm13, %v2934_v34  ;;  %vm191_vm0 = vmor %vm2957_vm10, %vm2956_vm9  ;;  %876 = vperm.xlu0 %1953, %v823_v32  }
  0x4f   :  { %vm194_vm3 = vmor %vm2959_vm2, %vm2958_vm14  ;;  %879 = vperm.xlu1 %1954, %v824_v33  }
  0x50   :  { %vm1688_vm6 = vmpackc.low %vm194_vm3, %vm191_vm0 }
  0x51   :  { %1891 = vmatprep.subr.msk.bf16.mxu1 %vm1688_vm6, %v2934_v34  ;;  %vm189_vm1 = vmor %vm2961_vm12, %vm2960_vm8 }
  0x52   :  { %vm192_vm15 = vmor %vm2963_vm5, %vm2962_vm11  ;;  %1892 = vmatpush3.bf16.msk.msra.mxu1 %vm1688_vm6, %v2934_v34  ;;  %918 = vperm.xlu0 %1953, %v837_v21  }
  0x53   :  { %vm1672_vm4 = vmpackc.low %vm192_vm15, %vm189_vm1  ;;  %921 = vperm.xlu1 %1954, %v838_v27  }
  0x54   :  { %1673 = vmatpush1.bf16.msk.msra.mxu0 %vm1672_vm4, %v2934_v34 }
  0x55   :  { %19 = vsyncpa [#allocation3], 0  ;;  %1894 = vmatmul.mubr.bf16.vlgmr.msra.gmra.mxu1 %v1961_v26  ;;  %v676_v29 = vld [vmem:[%s2925_s7] sm:$0xff]  ;;  %v677_v30 = vld [vmem:[%s2925_s7 + $0x8] sm:$0xff]  ;;  %v2604_v57 = vand.u32 127, %v50_v3  ;;  %s1995_s21 = smov [#allocation2]  }
  0x56   :  { %984 = vperm.xlu0 %1953, %v859_v9   ;;  %749 = vmatprep.mubr.bf16.mxu1 %v2933_v4  ;;  %v821_v35 = vld [vmem:[%s2919_s1] sm:$0xff]  ;;  %v822_v36 = vld [vmem:[%s2919_s1 + $0x8] sm:$0xff]  ;;  %v856_v40 = vld [vmem:[%s2919_s1 + $0x118] sm:$0xff]  ;;  %s1571_s22 = sshll.u32 %s1995_s21, 4  ;;  %s1572_s22 = int_to_ptr.vmem [resolvable:$true] %s1571_s22 }
  0x57   :  { %549 = vmatmul.mubr.bf16.vlgmr.msra.gmra.mxu0 %v2172_v39  ;;  %987 = vperm.xlu1 %1954, %v860_v28   ;;  %v857_v37 = vld [vmem:[%s2919_s1 + $0x120] sm:$0xff]  ;;  %v858_v38 = vld [vmem:[%s2919_s1 + $0x128] sm:$0xff]  ;;  %v855_v39 = vld [vmem:[%s2919_s1 + $0x110] sm:$0xff]  ;;  %p1976_p1 = scmp.lt.s32.totalorder %s1572_s22, %s1572_s22 }
  0x58   :  { %558 = vmatprep.mubr.bf16.mxu0 %v2933_v4  ;;  %v678_v41 = vld [vmem:[%s2925_s7 + $0x10] sm:$0xff]  ;;  %v679_v42 = vld [vmem:[%s2925_s7 + $0x18] sm:$0xff]  ;;  %v853_v43 = vld [vmem:[%s2919_s1 + $0x100] sm:$0xff] }
  0x59   :  { %v854_v44 = vld [vmem:[%s2919_s1 + $0x108] sm:$0xff]  ;;  %v1436_v45 = vld [vmem:[%s2929_s11 + $0x10] sm:$0xff]  ;;  %v1437_v46 = vld [vmem:[%s2929_s11 + $0x18] sm:$0xff] }
  0x5a   :  { %682 = vperm.xlu0 %1953, %v676_v29   ;;  %v1434_v47 = vld [vmem:[%s2929_s11] sm:$0xff]  ;;  %v1435_v48 = vld [vmem:[%s2929_s11 + $0x8] sm:$0xff]  ;;  %v1474_v51 = vld [vmem:[%s2931_s13 + $0x10] sm:$0xff] }
  0x5b   :  { %687 = vperm.xlu1 %1954, %v677_v30   ;;  %v1472_v49 = vld [vmem:[%s2931_s13] sm:$0xff]  ;;  %v1473_v50 = vld [vmem:[%s2931_s13 + $0x8] sm:$0xff]  ;;  %v1475_v52 = vld [vmem:[%s2931_s13 + $0x18] sm:$0xff] }
  0x5c   :  { %v2661_v23 = vld [vmem:[%s2924_s6] sm:$0xff]  }
  0x5e   :  { %870 = vperm.xlu0 %1953, %v821_v35  }
  0x5f   :  { %559 = vmatmul.mubr.bf16.gmra.mxu0 %v1961_v26  ;;  %873 = vperm.xlu1 %1954, %v822_v36  }
  0x62   :  { %978 = vperm.xlu0 %1953, %v857_v37  }
  0x63   :  { %981 = vperm.xlu1 %1954, %v858_v38  }
  0x66   :  { %972 = vperm.xlu0 %1953, %v855_v39  }
  0x67   :  { %975 = vperm.xlu1 %1954, %v856_v40  }
  0x6a   :  { %692 = vperm.xlu0 %1953, %v678_v41  }
  0x6b   :  { %697 = vperm.xlu1 %1954, %v679_v42  }
  0x6e   :  { %966 = vperm.xlu0 %1953, %v853_v43  }
  0x6f   :  { %969 = vperm.xlu1 %1954, %v854_v44  }
  0x72   :  { %1450 = vperm.xlu0 %1953, %v1436_v45  }
  0x73   :  { %1455 = vperm.xlu1 %1954, %v1437_v46  }
  0x76   :  { %1440 = vperm.xlu0 %1953, %v1434_v47  }
  0x77   :  { %1445 = vperm.xlu1 %1954, %v1435_v48  }
  0x7a   :  { %1478 = vperm.xlu0 %1953, %v1472_v49  }
  0x7b   :  { %1483 = vperm.xlu1 %1954, %v1473_v50  }
  0x7d   :  { %v2595_v53 = vpop.permute.xlu0 %634 }
  0x7e   :  { %v2597_v54 = vpop.permute.xlu1 %624  ;;  %1488 = vperm.xlu0 %1953, %v1474_v51  }
  0x7f   :  { %1493 = vperm.xlu1 %1954, %v1475_v52  }
  0x81   :  { %v2599_v55 = vpop.permute.xlu0 %639 }
  0x82   :  { %v2601_v56 = vpop.permute.xlu1 %629 }
  0x85   :  { %v961_v58 = vpop.permute.xlu0 %960 }
  0x86   :  { %v964_v59 = vpop.permute.xlu1 %963  ;;  %vm1043_vm7 = vcmp.eq.s32.totalorder %v2604_v57, %v961_v58 }
  0x87   :  { %vm1044_vm13 = vcmp.eq.s32.totalorder %v2604_v57, %v964_v59 }
  0x88   :  { %vm2608_vm9 = vmpackc.low %vm1044_vm13, %vm1043_vm7 }
  0x89   :  { %v913_v61 = vpop.permute.xlu0 %912 }
  0x8a   :  { %v916_v62 = vpop.permute.xlu1 %915  ;;  %vm1027_vm10 = vcmp.eq.s32.totalorder %v2604_v57, %v913_v61 }
  0x8b   :  { %vm1028_vm0 = vcmp.eq.s32.totalorder %v2604_v57, %v916_v62 }
  0x8c   :  { %vm2614_vm14 = vmpackc.low %vm1028_vm0, %vm1027_vm10 }
  0x8d   :  { %v955_v3 = vpop.permute.xlu0 %954 }
  0x8e   :  { %vm1041_vm2 = vcmp.eq.s32.totalorder %v2604_v57, %v955_v3  ;;  %v958_v0 = vpop.permute.xlu1 %957 }
  0x8f   :  { %vm1042_vm3 = vcmp.eq.s32.totalorder %v2604_v57, %v958_v0 }
  0x90   :  { %vm2620_vm6 = vmpackc.low %vm1042_vm3, %vm1041_vm2 }
  0x91   :  { %v907_v2 = vpop.permute.xlu0 %906 }
  0x92   :  { %vm1025_vm8 = vcmp.eq.s32.totalorder %v2604_v57, %v907_v2  ;;  %v910_v5 = vpop.permute.xlu1 %909 }
  0x93   :  { %vm1026_vm12 = vcmp.eq.s32.totalorder %v2604_v57, %v910_v5 }
  0x94   :  { %vm2626_vm1 = vmpackc.low %vm1026_vm12, %vm1025_vm8 }
  0x95   :  { %v949_v7 = vpop.permute.xlu0 %948 }
  0x96   :  { %vm1039_vm11 = vcmp.eq.s32.totalorder %v2604_v57, %v949_v7  ;;  %v952_v8 = vpop.permute.xlu1 %951 }
  0x97   :  { %vm1040_vm5 = vcmp.eq.s32.totalorder %v2604_v57, %v952_v8 }
  0x98   :  { %vm2632_vm15 = vmpackc.low %vm1040_vm5, %vm1039_vm11  ;;  %vm710_vm11 = vcmask 261120  }
  0x99   :  { %v901_v11 = vpop.permute.xlu0 %900  ;;  %1901 = vmatprep.mubr.msk.bf16.mxu0 %vm710_vm11, %v2661_v23 }
  0x9a   :  { %vm1023_vm4 = vcmp.eq.s32.totalorder %v2604_v57, %v901_v11  ;;  %v904_v12 = vpop.permute.xlu1 %903 }
  0x9b   :  { %vm1024_vm7 = vcmp.eq.s32.totalorder %v2604_v57, %v904_v12 }
  0x9c   :  { %vm2638_vm13 = vmpackc.low %vm1024_vm7, %vm1023_vm4 }
  0x9d   :  { %v943_v14 = vpop.permute.xlu0 %942 }
  0x9e   :  { %vm1037_vm10 = vcmp.eq.s32.totalorder %v2604_v57, %v943_v14  ;;  %v946_v15 = vpop.permute.xlu1 %945 }
  0x9f   :  { %vm1038_vm0 = vcmp.eq.s32.totalorder %v2604_v57, %v946_v15 }
  0xa0   :  { %vm2644_vm2 = vmpackc.low %vm1038_vm0, %vm1037_vm10 }
  0xa1   :  { %v2648_v17 = vpop.permute.xlu0 %1008 }
  0xa2   :  { %v2650_v18 = vpop.permute.xlu1 %1011  ;;  %vm1059_vm5 = vcmp.eq.s32.totalorder %v2604_v57, %v2648_v17  ;;  %v2731_v17 = vld [vmem:[%s2924_s6 + $0x8] sm:$0xff]  }
  0xa3   :  { %vm1060_vm4 = vcmp.eq.s32.totalorder %v2604_v57, %v2650_v18 }
  0xa4   :  { %vm2733_vm7 = vmpackc.low %vm1060_vm4, %vm1059_vm5 }
  0xa5   :  { %v895_v19 = vpop.permute.xlu0 %894 }
  0xa6   :  { %vm1021_vm3 = vcmp.eq.s32.totalorder %v2604_v57, %v895_v19  ;;  %v898_v20 = vpop.permute.xlu1 %897 }
  0xa7   :  { %vm1022_vm8 = vcmp.eq.s32.totalorder %v2604_v57, %v898_v20 }
  0xa8   :  { %vm2654_vm12 = vmpackc.low %vm1022_vm8, %vm1021_vm3 }
  0xa9   :  { %v2665_v24 = vpop.permute.xlu0 %936 }
  0xaa   :  { %v2667_v25 = vpop.permute.xlu1 %939 }
  0xad   :  { %v2669_v31 = vpop.permute.xlu0 %1002 }
  0xae   :  { %v2671_v32 = vpop.permute.xlu1 %1005  ;;  %vm1057_vm10 = vcmp.eq.s32.totalorder %v2604_v57, %v2669_v31 }
  0xaf   :  { %vm1058_vm0 = vcmp.eq.s32.totalorder %v2604_v57, %v2671_v32 }
  0xb0   :  { %vm2754_vm3 = vmpackc.low %vm1058_vm0, %vm1057_vm10 }
  0xb1   :  { %v2673_v33 = vpop.permute.xlu0 %888 }
  0xb2   :  { %v2675_v21 = vpop.permute.xlu1 %891 }
  0xb5   :  { %v2677_v27 = vpop.permute.xlu0 %930 }
  0xb6   :  { %v2679_v26 = vpop.permute.xlu1 %933 }
  0xb9   :  { %v2681_v9 = vpop.permute.xlu0 %996 }
  0xba   :  { %v2683_v28 = vpop.permute.xlu1 %999  ;;  %vm1055_vm8 = vcmp.eq.s32.totalorder %v2604_v57, %v2681_v9 }
  0xbb   :  { %vm1056_vm5 = vcmp.eq.s32.totalorder %v2604_v57, %v2683_v28 }
  0xbc   :  { %vm1780_vm4 = vmpackc.low %vm1056_vm5, %vm1055_vm8 }
  0xbd   :  { %v2687_v30 = vpop.permute.xlu0 %882 }
  0xbe   :  { %v2689_v35 = vpop.permute.xlu1 %885 }
  0xbf   :  { %2980 = vst [vmem:[#allocation5_spill] sm:$0xff] %v2689_v35 }
  0xc1   :  { %v2691_v38 = vpop.permute.xlu0 %924 }
  0xc2   :  { %2981 = vst [vmem:[#allocation6_spill] sm:$0xff] %v2691_v38  ;;  %v2693_v39 = vpop.permute.xlu1 %927 }
  0xc3   :  { %2982 = vst [vmem:[#allocation7_spill] sm:$0xff] %v2693_v39 }
  0xc5   :  { %v2695_v43 = vpop.permute.xlu0 %990 }
  0xc6   :  { %v2697_v44 = vpop.permute.xlu1 %993  ;;  %v2995_v10 = vld [vmem:[#allocation5_spill] sm:$0xff] }
  0xc7   :  { %v1875_v41 = vpop.f32.mrf.mxu1  ;;  %vm1054_vm10 = vcmp.eq.s32.totalorder %v2604_v57, %v2697_v44 }
  0xc8   :  { %v2685_v29 = vpop.f32.mrf.mxu0 }
  0xc9   :  { %v489_v45 = vpop.f32.mrf.mxu1  ;;  %v2699_v48 = vpop.permute.xlu0 %876  ;;  %v2996_v13 = vld [vmem:[#allocation6_spill] sm:$0xff] }
  0xca   :  { %v438_v36 = vpop.f32.mrf.mxu0  ;;  %2983 = vst [vmem:[#allocation8_spill] sm:$0xff] %v2699_v48  ;;  %v2701_v49 = vpop.permute.xlu1 %879  ;;  %v2997_v16 = vld [vmem:[#allocation7_spill] sm:$0xff] }
  0xcb   :  { %v1876_v47 = vpop.f32.mrf.mxu1  ;;  %2984 = vst [vmem:[#allocation9_spill] sm:$0xff] %v2701_v49 }
  0xcc   :  { %v440_v37 = vpop.f32.mrf.mxu0 }
  0xcd   :  { %v492_v51 = vpop.f32.mrf.mxu1  ;;  %v2703_v59 = vpop.permute.xlu0 %918 }
  0xce   :  { %v442_v40 = vpop.f32.mrf.mxu0  ;;  %2985 = vst [vmem:[#allocation10_spill] sm:$0xff] %v2703_v59  ;;  %v2705_v61 = vpop.permute.xlu1 %921 }
  0xcf   :  { %2986 = vst [vmem:[#allocation11_spill] sm:$0xff] %v2705_v61 }
  0xd0   :  { %v446_v42 = vpop.f32.mrf.mxu0 }
  0xd1   :  { %v2708_v15 = vpop.permute.xlu0 %984  ;;  %v2998_v22 = vld [vmem:[#allocation8_spill] sm:$0xff] }
  0xd2   :  { %v448_v46 = vpop.f32.mrf.mxu0  ;;  %v2710_v19 = vpop.permute.xlu1 %987 }
  0xd3   :  { %vm1052_vm8 = vcmp.eq.s32.totalorder %v2604_v57, %v2710_v19 }
  0xd4   :  { %v450_v50 = vpop.f32.mrf.mxu0 }
  0xd6   :  { %v452_v52 = vpop.f32.mrf.mxu0  ;;  %v2717_v48 = vpop.permute.xlu1 %687 }
 0x115   :  { %v1895_v58 = vpop.f32.mrf.mxu1 }
 0x116   :  { %v612_v3 = vadd.f32 %v1895_v58, %v1875_v41 }
 0x117   :  { %v550_v62 = vpop.f32.mrf.mxu0  ;;  %v603_v0 = vpop.f32.mrf.mxu1 }
 0x118   :  { %v604_v5 = vadd.f32 %v603_v0, %v489_v45  ;;  %v650_v8 = vadd.f32 %v2595_v53, %v612_v3 }
 0x119   :  { %v552_v2 = vpop.f32.mrf.mxu0  ;;  %v1896_v7 = vpop.f32.mrf.mxu1 }
 0x11a   :  { %v615_v12 = vadd.f32 %v1896_v7, %v1876_v47  ;;  %v644_v20 = vadd.f32 %v2597_v54, %v604_v5  ;;  %v662_v41 = vmax.f32 %v650_v8, 0.0  ;;  %v2715_v7 = vpop.permute.xlu0 %682 }
 0x11b   :  { %v554_v11 = vpop.f32.mrf.mxu0  ;;  %v606_v14 = vpop.f32.mrf.mxu1 }
 0x11c   :  { %v653_v4 = vadd.f32 %v2599_v55, %v615_v12  ;;  %v607_v61 = vadd.f32 %v606_v14, %v492_v51  ;;  %v656_v59 = vmax.f32 %v644_v20, 0.0  ;;  %v553_v51 = vadd.f32 %v552_v2, %v438_v36 }
 0x11d   :  { %v556_v34 = vpop.f32.mrf.mxu0  ;;  %v551_v36 = vadd.f32 %v550_v62, %v2685_v29 }
 0x11e   :  { %v665_v58 = vmax.f32 %v653_v4, 0.0  ;;  %v647_v45 = vadd.f32 %v2601_v56, %v607_v61  ;;  %v557_v39 = vadd.f32 %v556_v34, %v442_v40  ;;  %v555_v4 = vadd.f32 %v554_v11, %v440_v37  ;;  %v2737_v37 = vpop.permute.xlu0 %870 }
 0x11f   :  { %v560_v0 = vpop.f32.mrf.mxu0  ;;  %v642_v62 = vadd.f32 %v2597_v54, %v551_v36 }
 0x120   :  { %v659_v3 = vmax.f32 %v647_v45, 0.0  ;;  %v675_v47 = vpack.c.bf16 %v665_v58, %v662_v41  ;;  %v561_v5 = vadd.f32 %v560_v0, %v446_v42  ;;  %v646_v14 = vadd.f32 %v2601_v56, %v557_v39  ;;  %v2739_v39 = vpop.permute.xlu1 %873 }
 0x121   :  { %v562_v49 = vpop.f32.mrf.mxu0  ;;  %v654_v58 = vmax.f32 %v642_v62, 0.0 }
 0x122   :  { %v563_v38 = vadd.f32 %v562_v49, %v448_v46  ;;  %1897 = vmatprep.subr.bf16.mxu0 %v675_v47  ;;  %v672_v12 = vpack.c.bf16 %v659_v3, %v656_v59  ;;  %v2989_v49 = vmov 1.0|1.0   ;;  %v979_v11 = vpop.permute.xlu0 %978 }
 0x123   :  { %v564_v35 = vpop.f32.mrf.mxu0  ;;  %1898 = vmatpush3.bf16.msra.mxu0 %v675_v47  ;;  %vm1049_vm5 = vcmp.eq.s32.totalorder %v2604_v57, %v979_v11 }
 0x124   :  { %v565_v8 = vadd.f32 %v564_v35, %v450_v50  ;;  %1899 = vmatprep.subr.bf16.mxu0 %v672_v12  ;;  %v649_v34 = vadd.f32 %v2595_v53, %v563_v38  ;;  %v648_v35 = vadd.f32 %v2595_v53, %v561_v5  ;;  %v643_v38 = vadd.f32 %v2597_v54, %v553_v51  ;;  %v982_v20 = vpop.permute.xlu1 %981 }
 0x125   :  { %v566_v61 = vpop.f32.mrf.mxu0  ;;  %v645_v53 = vadd.f32 %v2601_v56, %v555_v4  ;;  %v658_v50 = vmax.f32 %v646_v14, 0.0 }
 0x126   :  { %v651_v40 = vadd.f32 %v2599_v55, %v565_v8  ;;  %v567_v42 = vadd.f32 %v566_v61, %v452_v52  ;;  %v661_v52 = vmax.f32 %v649_v34, 0.0  ;;  %v655_v32 = vmax.f32 %v643_v38, 0.0  ;;  %v973_v28 = vpop.permute.xlu0 %972 }
 0x127   :  { %1900 = vmatpush3.bf16.msra.mxu0 %v672_v12  ;;  %v657_v54 = vmax.f32 %v645_v53, 0.0  ;;  %v1965_v53 = vld [vmem:[%s2927_s9] sm:$0xff]  }
 0x128   :  { %v652_v46 = vadd.f32 %v2599_v55, %v567_v42  ;;  %v663_v29 = vmax.f32 %v651_v40, 0.0  ;;  %1905 = vmatprep.subr.msk.bf16.mxu0 %vm2733_vm7, %v2989_v49  ;;  %v660_v55 = vmax.f32 %v648_v35, 0.0  ;;  %v671_v41 = vpack.c.bf16 %v658_v50, %v655_v32  ;;  %v976_v45 = vpop.permute.xlu1 %975 }
 0x129   :  { %v670_v9 = vpack.c.bf16 %v657_v54, %v654_v58 }
 0x12a   :  { %v664_v59 = vmax.f32 %v652_v46, 0.0  ;;  %1902 = vmatmul.mubr.msk.bf16.vlgmr.msra.gmra.mxu0 %vm710_vm11, %v2731_v17  ;;  %v673_v2 = vpack.c.bf16 %v663_v29, %v660_v55  ;;  %v2798_v60 = vpop.permute.xlu0 %692  ;;  %v1966_v29 = vld [vmem:[%s2927_s9 + $0x8] sm:$0xff]  }
 0x12b   :  { %1906 = vmatpush3.bf16.msk.msra.mxu0 %vm2733_vm7, %v2989_v49  ;;  %vm1053_vm7 = vcmp.eq.s32.totalorder %v2604_v57, %v2695_v43  ;;  %v2992_v43 = vmov 0  }
 0x12c   :  { %v674_v56 = vpack.c.bf16 %v664_v59, %v661_v52  ;;  %1907 = vmatprep.subr.msk.bf16.mxu0 %vm2754_vm3, %v2989_v49  ;;  %vm1782_vm0 = vmpackc.low %vm1054_vm10, %vm1053_vm7  ;;  %vm1048_vm7 = vcmp.eq.s32.totalorder %v2604_v57, %v976_v45 }
 0x12e   :  { %729 = vmatprep.subr.bf16.mxu1 %v674_v56  ;;  %v967_v1 = vpop.permute.xlu0 %966 }
 0x12f   :  { %730 = vmatpush1.bf16.msra.mxu1 %v673_v2  ;;  %1908 = vmatpush3.bf16.msk.msra.mxu0 %vm2754_vm3, %v2989_v49  ;;  %vm1051_vm3 = vcmp.eq.s32.totalorder %v2604_v57, %v2708_v15 }
 0x130   :  { %731 = vmatprep.subr.bf16.mxu1 %v671_v41  ;;  %1909 = vmatprep.subr.msk.bf16.mxu0 %vm1780_vm4, %v2989_v49 }
 0x133   :  { %732 = vmatpush1.bf16.msra.mxu1 %v670_v9  ;;  %1910 = vmatpush3.bf16.msk.msra.mxu0 %vm1780_vm4, %v2989_v49  ;;  %vm1050_vm4 = vcmp.eq.s32.totalorder %v2604_v57, %v982_v20 }
 0x134   :  { %1822 = vmatprep.subr.msk.bf16.mxu1 %vm2608_vm9, %v2989_v49  ;;  %1911 = vmatprep.subr.msk.bf16.mxu0 %vm1782_vm0, %v2989_v49  ;;  %vm1784_vm9 = vmpackc.low %vm1052_vm8, %vm1051_vm3  ;;  %vm1019_vm8 = vcmp.eq.s32.totalorder %v2604_v57, %v2673_v33  ;;  %v3001_v33 = vld [vmem:[#allocation11_spill] sm:$0xff] }
 0x136   :  { %1692 = vmatmul.mubr.msk.bf16.vlgmr.msra.gmra.mxu1 %vm710_vm11, %v2661_v23  ;;  %v2800_v23 = vpop.permute.xlu1 %697 }
 0x137   :  { %1823 = vmatpush3.bf16.msk.msra.mxu1 %vm2614_vm14, %v2989_v49  ;;  %759 = vmatprep.mubr.bf16.mxu1 %v2992_v43  ;;  %vm1786_vm14 = vmpackc.low %vm1050_vm4, %vm1049_vm5  ;;  %vm1034_vm5 = vcmp.eq.s32.totalorder %v2604_v57, %v2679_v26 }
 0x138   :  { %1824 = vmatprep.subr.msk.bf16.mxu1 %vm2620_vm6, %v2989_v49  ;;  %1912 = vmatpush3.bf16.msk.msra.mxu0 %vm1782_vm0, %v2989_v49  ;;  %vm1047_vm6 = vcmp.eq.s32.totalorder %v2604_v57, %v973_v28 }
 0x139   :  { %1913 = vmatprep.subr.msk.bf16.mxu0 %vm1784_vm9, %v2989_v49  ;;  %vm2821_vm10 = vmpackc.low %vm1048_vm7, %vm1047_vm6  ;;  %vm1018_vm7 = vcmp.eq.s32.totalorder %v2604_v57, %v2995_v10  ;;  %v1969_v10 = vld [vmem:[%s2930_s12] sm:$0xff]  }
 0x13a   :  { %v970_v6 = vpop.permute.xlu1 %969 }
 0x13b   :  { %1825 = vmatpush3.bf16.msk.msra.mxu1 %vm2626_vm1, %v2989_v49  ;;  %vm1035_vm1 = vcmp.eq.s32.totalorder %v2604_v57, %v2665_v24  ;;  %vm1046_vm0 = vcmp.eq.s32.totalorder %v2604_v57, %v970_v6  ;;  %v2999_v24 = vld [vmem:[#allocation9_spill] sm:$0xff]  ;;  %v1968_v6 = vld [vmem:[%s2928_s10 + $0x8] sm:$0xff]  }
 0x13c   :  { %1826 = vmatprep.subr.msk.bf16.mxu1 %vm2632_vm15, %v2989_v49  ;;  %1914 = vmatpush3.bf16.msk.msra.mxu0 %vm1784_vm9, %v2989_v49  ;;  %vm1036_vm15 = vcmp.eq.s32.totalorder %v2604_v57, %v2667_v25  ;;  %vm1020_vm9 = vcmp.eq.s32.totalorder %v2604_v57, %v2675_v21  ;;  %v3000_v25 = vld [vmem:[#allocation10_spill] sm:$0xff] }
 0x13d   :  { %1915 = vmatprep.subr.msk.bf16.mxu0 %vm1786_vm14, %v2989_v49  ;;  %vm1768_vm3 = vmpackc.low %vm1036_vm15, %vm1035_vm1  ;;  %vm1031_vm1 = vcmp.eq.s32.totalorder %v2604_v57, %v2996_v13  ;;  %vm1032_vm15 = vcmp.eq.s32.totalorder %v2604_v57, %v2997_v16 }
 0x13e   :  { %1693 = vmatmul.mubr.msk.bf16.gmra.mxu1 %vm710_vm11, %v2731_v17 }
 0x13f   :  { %1827 = vmatpush3.bf16.msk.msra.mxu1 %vm2638_vm13, %v2989_v49  ;;  %vm1045_vm13 = vcmp.eq.s32.totalorder %v2604_v57, %v967_v1 }
 0x140   :  { %1828 = vmatprep.subr.msk.bf16.mxu1 %vm2644_vm2, %v2989_v49  ;;  %1916 = vmatpush3.bf16.msk.msra.mxu0 %vm1786_vm14, %v2989_v49  ;;  %vm1033_vm2 = vcmp.eq.s32.totalorder %v2604_v57, %v2677_v27  ;;  %vm1790_vm4 = vmpackc.low %vm1046_vm0, %vm1045_vm13  ;;  %vm1015_vm0 = vcmp.eq.s32.totalorder %v2604_v57, %v2998_v22  ;;  %v1451_v22 = vpop.permute.xlu0 %1450 }
 0x141   :  { %1917 = vmatprep.subr.msk.bf16.mxu0 %vm2821_vm10, %v2989_v49  ;;  %vm1752_vm14 = vmpackc.low %vm1020_vm9, %vm1019_vm8  ;;  %vm1029_vm8 = vcmp.eq.s32.totalorder %v2604_v57, %v3000_v25  ;;  %vm1030_vm9 = vcmp.eq.s32.totalorder %v2604_v57, %v3001_v33  ;;  %v1456_v25 = vpop.permute.xlu1 %1455 }
 0x142   :  { %vm1770_vm6 = vmpackc.low %vm1034_vm5, %vm1033_vm2 }
 0x143   :  { %1829 = vmatpush3.bf16.msk.msra.mxu1 %vm2654_vm12, %v2989_v49  ;;  %vm1017_vm12 = vcmp.eq.s32.totalorder %v2604_v57, %v2687_v30  ;;  %vm1772_vm13 = vmpackc.low %vm1032_vm15, %vm1031_vm1 }
 0x144   :  { %1830 = vmatprep.subr.msk.bf16.mxu1 %vm1768_vm3, %v2989_v49  ;;  %1918 = vmatpush3.bf16.msk.msra.mxu0 %vm2821_vm10, %v2989_v49  ;;  %vm1754_vm10 = vmpackc.low %vm1018_vm7, %vm1017_vm12  ;;  %vm1016_vm3 = vcmp.eq.s32.totalorder %v2604_v57, %v2999_v24  ;;  %vm1378_vm12 = vcmask 130048   ;;  %vm1561_vm7 = vcmask 523264  }
 0x145   :  { %1919 = vmatprep.subr.msk.bf16.mxu0 %vm1790_vm4, %v2989_v49  ;;  %vm1756_vm2 = vmpackc.low %vm1016_vm3, %vm1015_vm0 }
 0x146   :  { %vm1774_vm5 = vmpackc.low %vm1030_vm9, %vm1029_vm8 }
 0x147   :  { %1831 = vmatpush3.bf16.msk.msra.mxu1 %vm1752_vm14, %v2989_v49  ;;  %vm1014_vm14 = vcmp.eq.s32.totalorder %v2604_v57, %v2739_v39 }
 0x148   :  { %1832 = vmatprep.subr.msk.bf16.mxu1 %vm1770_vm6, %v2989_v49  ;;  %1920 = vmatpush3.bf16.msk.msra.mxu0 %vm1790_vm4, %v2989_v49  ;;  %vm1013_vm4 = vcmp.eq.s32.totalorder %v2604_v57, %v2737_v37 }
 0x149   :  { %vm1758_vm6 = vmpackc.low %vm1014_vm14, %vm1013_vm4 }
 0x14b   :  { %1833 = vmatpush3.bf16.msk.msra.mxu1 %vm1754_vm10, %v2989_v49 }
 0x14c   :  { %1834 = vmatprep.subr.msk.bf16.mxu1 %vm1772_vm13, %v2989_v49 }
 0x14f   :  { %1835 = vmatpush3.bf16.msk.msra.mxu1 %vm1756_vm2, %v2989_v49 }
 0x150   :  { %1836 = vmatprep.subr.msk.bf16.mxu1 %vm1774_vm5, %v2989_v49 }
 0x153   :  { %1837 = vmatpush3.bf16.msk.msra.mxu1 %vm1758_vm6, %v2989_v49  ;;  %v1967_v49 = vld [vmem:[%s2928_s10] sm:$0xff]  }
 0x1ea   :  { %v1903_v21 = vpop.f32.mrf.mxu0 }
 0x1eb   :  { %v813_v0 = vadd.f32 %v1903_v21, %v2798_v60 }
 0x1ec   :  { %v804_v27 = vpop.f32.mrf.mxu0 }
 0x1ed   :  { %v805_v15 = vadd.f32 %v804_v27, %v2715_v7 }
 0x1ee   :  { %v1904_v26 = vpop.f32.mrf.mxu0 }
 0x1ef   :  { %v816_v30 = vadd.f32 %v1904_v26, %v2800_v23 }
 0x1f0   :  { %v807_v44 = vpop.f32.mrf.mxu0 }
 0x1f1   :  { %v808_v19 = vadd.f32 %v807_v44, %v2717_v48  ;;  %v1186_v3 = vpack.c.bf16 %v816_v30, %v813_v0  ;;  %v1441_v44 = vpop.permute.xlu0 %1440 }
 0x1f3   :  { %v1183_v57 = vpack.c.bf16 %v808_v19, %v805_v15 }
 0x1f5   :  { %1921 = vmatprep.mubr.bf16.mxu0 %v1183_v57 }
 0x1f6   :  { %v751_v47 = vpop.f32.mrf.mxu1  ;;  %1922 = vmatmul.mubr.bf16.vlgmr.msra.gmra.mxu0 %v1186_v3 }
 0x1f7   :  { %v752_v14 = vadd.f32 %v751_v47, %v2715_v7  ;;  %1929 = vmatprep.mubr.msk.bf16.mxu0 %vm710_vm11, %v1967_v49 }
 0x1f8   :  { %v753_v5 = vpop.f32.mrf.mxu1 }
 0x1f9   :  { %v754_v4 = vadd.f32 %v753_v5, %v2715_v7  ;;  %v1964_v7 = vld [vmem:[%s2926_s8] sm:$0xff]  }
 0x1fa   :  { %v755_v12 = vpop.f32.mrf.mxu1  ;;  %1933 = vmatprep.subr.bf16.mxu1 %v1964_v7 }
 0x1fb   :  { %v756_v51 = vadd.f32 %v755_v12, %v2717_v48  ;;  %v1446_v12 = vpop.permute.xlu1 %1445 }
 0x1fc   :  { %v757_v8 = vpop.f32.mrf.mxu1 }
 0x1fd   :  { %v758_v61 = vadd.f32 %v757_v8, %v2717_v48  ;;  %v1181_v42 = vpack.c.bf16 %v756_v51, %v752_v14 }
 0x1fe   :  { %v761_v34 = vpop.f32.mrf.mxu1 }
 0x1ff   :  { %v1182_v40 = vpack.c.bf16 %v758_v61, %v754_v4  ;;  %v762_v38 = vadd.f32 %v761_v34, %v2798_v60 }
 0x200   :  { %v763_v36 = vpop.f32.mrf.mxu1 }
 0x201   :  { %1219 = vmatprep.mubr.bf16.mxu1 %v1182_v40  ;;  %v764_v37 = vadd.f32 %v763_v36, %v2798_v60  ;;  %v1479_v36 = vpop.permute.xlu0 %1478 }
 0x202   :  { %v765_v35 = vpop.f32.mrf.mxu1  ;;  %1220 = vmatmul.mubr.bf16.vlgmr.msra.gmra.mxu1 %v1181_v42  ;;  %v1970_v42 = vld [vmem:[%s2930_s12 + $0x8] sm:$0xff]   ;;  %s1971_s12 = scalar_lea.vmem %s1572_s22, 512 }
 0x203   :  { %v766_v17 = vadd.f32 %v765_v35, %v2800_v23  ;;  %1934 = vmatpush3.bf16.msra.mxu1 %v1964_v7  ;;  %v1484_v35 = vpop.permute.xlu1 %1483  ;;  %p1972_p0 = scmp.ne.s32.totalorder %s1572_s22, %s1971_s12  ;;  %p1977_p2 = scmp.lt.s32.totalorder %s1971_s12, %s1971_s12 }
 0x204   :  { %v767_v18 = vpop.f32.mrf.mxu1 }
 0x205   :  { %v768_v39 = vadd.f32 %v767_v18, %v2800_v23  ;;  %v1184_v48 = vpack.c.bf16 %v766_v17, %v762_v38  ;;  %v1489_v17 = vpop.permute.xlu0 %1488  ;;  %p1978_p3 = por %p1977_p2, %p1976_p1 }
 0x207   :  { %v1185_v46 = vpack.c.bf16 %v768_v39, %v764_v37  ;;  %p1979_p4 = pnand %p1978_p3, %p1972_p0 }
 0x209   :  { %1227 = vmatprep.mubr.bf16.mxu1 %v1185_v46  ;;  %v1494_v46 = vpop.permute.xlu1 %1493 }
 0x20a   :  { %1228 = vmatmul.mubr.bf16.gmra.mxu1 %v1184_v48 }
 0x20b   :  { %1935 = vmatprep.mubr.msk.bf16.mxu1 %vm1378_vm12, %v1965_v53 }
 0x212   :  { %1936 = vmatmul.mubr.msk.bf16.vlgmr.msra.gmra.mxu1 %vm1378_vm12, %v1966_v29 }
 0x2b6   :  { %v1923_v59 = vpop.f32.mrf.mxu0 }
 0x2b8   :  { %v1270_v31 = vpop.f32.mrf.mxu0 }
 0x2ba   :  { %v1924_v54 = vpop.f32.mrf.mxu0 }
 0x2bc   :  { %v1273_v28 = vpop.f32.mrf.mxu0 }
 0x2c2   :  { %v1838_v50 = vpop.f32.mrf.mxu1 }
 0x2c4   :  { %v1839_v52 = vpop.f32.mrf.mxu1 }
 0x2c5   :  { %v1840_v58 = vadd.f32 %v1839_v52, %v1838_v50 }
 0x2c6   :  { %v1841_v62 = vpop.f32.mrf.mxu1 }
 0x2c7   :  { %v1271_v23 = vadd.f32 %v1840_v58, %v1270_v31 }
 0x2c8   :  { %v1842_v55 = vpop.f32.mrf.mxu1 }
 0x2c9   :  { %v1843_v11 = vadd.f32 %v1842_v55, %v1841_v62 }
 0x2ca   :  { %v1844_v32 = vpop.f32.mrf.mxu1 }
 0x2cb   :  { %v1274_v45 = vadd.f32 %v1843_v11, %v1273_v28 }
 0x2cc   :  { %v1845_v56 = vpop.f32.mrf.mxu1 }
 0x2cd   :  { %v1846_v20 = vadd.f32 %v1845_v56, %v1844_v32  ;;  %v1295_v1 = vpack.c.bf16 %v1274_v45, %v1271_v23 }
 0x2ce   :  { %v1847_v2 = vpop.f32.mrf.mxu1 }
 0x2cf   :  { %v1279_v43 = vadd.f32 %v1923_v59, %v1846_v20 }
 0x2d0   :  { %v1848_v41 = vpop.f32.mrf.mxu1 }
 0x2d1   :  { %v1849_v9 = vadd.f32 %v1848_v41, %v1847_v2 }
 0x2d2   :  { %v1937_v13 = vpop.f32.mrf.mxu1 }
 0x2d3   :  { %v1282_v60 = vadd.f32 %v1924_v54, %v1849_v9 }
 0x2d4   :  { %v1419_v16 = vpop.f32.mrf.mxu1 }
 0x2d5   :  { %v1296_v63 = vpack.c.bf16 %v1282_v60, %v1279_v43 }
 0x2d6   :  { %v1938_v21 = vpop.f32.mrf.mxu1 }
 0x2d7   :  { %1925 = vmatprep.subr.bf16.mxu0 %v1296_v63 }
 0x2d8   :  { %1926 = vmatpush3.bf16.msra.mxu0 %v1296_v63  ;;  %v1422_v0 = vpop.f32.mrf.mxu1 }
 0x2d9   :  { %1927 = vmatprep.subr.bf16.mxu0 %v1295_v1 }
 0x2dc   :  { %1928 = vmatpush3.bf16.msra.mxu0 %v1295_v1 }
 0x2df   :  { %1930 = vmatmul.mubr.msk.bf16.vlgmr.msra.gmra.mxu0 %vm710_vm11, %v1968_v6 }
 0x2e0   :  { %1943 = vmatprep.mubr.msk.bf16.mxu0 %vm710_vm11, %v1969_v10 }
 0x39f   :  { %v1931_v24 = vpop.f32.mrf.mxu0 }
 0x3a0   :  { %v1428_v33 = vadd.f32 %v1937_v13, %v1931_v24 }
 0x3a1   :  { %v1347_v27 = vpop.f32.mrf.mxu0 }
 0x3a2   :  { %v1420_v26 = vadd.f32 %v1419_v16, %v1347_v27  ;;  %v1460_v15 = vadd.f32 %v1451_v22, %v1428_v33 }
 0x3a3   :  { %v1932_v30 = vpop.f32.mrf.mxu0 }
 0x3a4   :  { %v1431_v19 = vadd.f32 %v1938_v21, %v1932_v30  ;;  %v1458_v3 = vadd.f32 %v1441_v44, %v1420_v26  ;;  %v1464_v51 = vmax.f32 %v1460_v15, 0.0 }
 0x3a5   :  { %v1350_v57 = vpop.f32.mrf.mxu0 }
 0x3a6   :  { %v1461_v47 = vadd.f32 %v1456_v25, %v1431_v19  ;;  %v1423_v5 = vadd.f32 %v1422_v0, %v1350_v57  ;;  %v1462_v61 = vmax.f32 %v1458_v3, 0.0 }
 0x3a8   :  { %v1465_v8 = vmax.f32 %v1461_v47, 0.0  ;;  %v1459_v4 = vadd.f32 %v1446_v12, %v1423_v5 }
 0x3aa   :  { %v1463_v14 = vmax.f32 %v1459_v4, 0.0  ;;  %v1471_v34 = vpack.c.bf16 %v1465_v8, %v1464_v51 }
 0x3ac   :  { %1939 = vmatprep.subr.bf16.mxu0 %v1471_v34  ;;  %v1470_v40 = vpack.c.bf16 %v1463_v14, %v1462_v61 }
 0x3ad   :  { %1940 = vmatpush3.bf16.msra.mxu0 %v1471_v34 }
 0x3ae   :  { %1941 = vmatprep.subr.bf16.mxu0 %v1470_v40 }
 0x3b1   :  { %1942 = vmatpush3.bf16.msra.mxu0 %v1470_v40 }
 0x3b4   :  { %1944 = vmatmul.mubr.msk.bf16.vlgmr.msra.gmra.mxu0 %vm710_vm11, %v1970_v42 }
 0x474   :  { %v1945_v18 = vpop.f32.mrf.mxu0 }
 0x475   :  { %v1555_v37 = vadd.f32 %v1945_v18, %v1489_v17 }
 0x476   :  { %v1546_v39 = vpop.f32.mrf.mxu0 }
 0x477   :  { %1564 = vst.msk [vmem:[#allocation2 + $0x10] sm:$0xff] %vm1561_vm7, %v1555_v37  ;;  %v1547_v38 = vadd.f32 %v1546_v39, %v1479_v36 }
 0x478   :  { %v1946_v48 = vpop.f32.mrf.mxu0 }
 0x479   :  { %1562 = vst.msk [vmem:[#allocation2] sm:$0xff] %vm1561_vm7, %v1547_v38  ;;  %v1558_v7 = vadd.f32 %v1946_v48, %v1494_v46 }
 0x47a   :  { %v1549_v53 = vpop.f32.mrf.mxu0 }
 0x47b   :  { %1565 = vst.msk [vmem:[#allocation2 + $0x18] sm:$0xff] %vm1561_vm7, %v1558_v7  ;;  %v1550_v29 = vadd.f32 %v1549_v53, %v1484_v35 }
 0x47d   :  { %1563 = vst.msk [vmem:[#allocation2 + $0x8] sm:$0xff] %vm1561_vm7, %v1550_v29 }
 0x47e   :  { %1982 = shalt.err (!%p1979_p4)
}
 0x47f   :  { %s1996_s23 = smov 128   ;;  %s1997_s1 = smov 8  }
 0x480   :  { %1577 = dma.vmem_to_hbm [thread:$0]  %s1572_s22, 512, %s2932_s14, [#allocation3], %s1996_s23, %s1996_s23, %s1997_s1  }
 0x481   :  { %1991 = dma.done.wait [#allocation3], 512  }
 0x482   :  { %1992 = vsyncadd [#allocation3], 4294966784 }
 0x483   :  { %1581 = vsyncpa [#allocation3], 1 }

</bundles_post_ra>
